<compile_context>
chip_gen: v7x
topology: tpu7x:2x2x1
jax: 0.10.0
libtpu: 0.0.40
codegen_flags: <defaults>
</compile_context>

<pallas_src>
import functools

import jax
import jax.numpy as jnp
from jax import lax
from jax.experimental import pallas as pl
from jax.experimental.pallas import tpu as pltpu


def _round_up(x, m):
    return (x + m - 1) // m * m


def _pick_w_tile(wo, cout, max_lanes=512):
    """Largest divisor Wt of Wo with Wt*Cout a lane-dense multiple of 128 and
    <= max_lanes; falls back to the largest divisor that fits, then 1."""
    best = None
    for wt in range(min(wo, max(1, max_lanes // cout)), 0, -1):
        if wo % wt:
            continue
        if (wt * cout) % 128 == 0:
            return wt
        if best is None:
            best = wt
    return best if best is not None else 1


def prepare_deconv_weight(weight_t, kernel_size, w_tile, compute_dtype):
    """PyTorch ConvTranspose3d weight (Cin, Cout, K, K, K) -> per-tap banded
    direct-conv weight of shape (K*K, Wpt*Cin, Wt*Cout), Wpt = Wt + K - 1.

    Output-column block v (position inside the W tile) holds the flipped taps
    mapping padded-input W positions [v, v+K) onto that output.  The band is
    translation invariant, so one block serves every W tile.  In real use this
    is built once per weight and cached (review: hoist weight transform)."""
    K = kernel_size
    cin, cout = weight_t.shape[0], weight_t.shape[1]
    # transposed conv == direct conv with spatially flipped, (Cin,Cout)-swapped weight
    w_conv = jnp.transpose(jnp.flip(weight_t, axis=(2, 3, 4)), (2, 3, 4, 0, 1))
    wpt = w_tile + K - 1
    band = jnp.zeros((K, K, wpt, cin, w_tile, cout), w_conv.dtype)
    for v in range(w_tile):
        band = band.at[:, :, v:v + K, :, v, :].set(w_conv)
    return band.reshape(K * K, wpt * cin, w_tile * cout).astype(compute_dtype)


def _make_deconv_kernel(K, Hp, Rout):
    """One (n, w_tile) grid step: K*K lane-dense MXU matmuls, f32 accumulation.

    Row space: flat padded-input rows r_in = dp*Hp + hp.  Output row (do, ho)
    lives at r_out = do*Hp + ho and tap (kd, kh) reads r_in = r_out + delta,
    delta = kd*Hp + kh, so each tap is a static row-shift of the same matmul --
    every operand in the kernel is 2-D, no reshapes/relayouts.  Rows with
    ho >= Ho are junk and are discarded by the wrapper."""
    KK = K * K

    def kernel(x_ref, w_ref, o_ref):
        x = x_ref[0, 0]                                   # (Rin, Wpt*Cin), aligned load
        acc = None
        for t in range(KK):
            kd, kh = divmod(t, K)
            delta = kd * Hp + kh
            y = jnp.dot(x, w_ref[t], preferred_element_type=jnp.float32)
            y = y[delta:delta + Rout, :]                  # static f32 row shift
            acc = y if acc is None else acc + y
        o_ref[0, 0] = acc.astype(o_ref.dtype)

    return kernel


@functools.partial(jax.jit, static_argnames=("kernel_size", "stride", "compute_dtype"))
def deconv_block_3d(x_ncdhw, weight_t, *, kernel_size=3, stride=1,
                    compute_dtype=jnp.bfloat16):
    """ConvTranspose3d(Cin, Cout, k, stride, padding=k//2,
    output_padding=stride-1, bias=False).

    x_ncdhw : (N, Cin, D, H, W)      PyTorch activation layout
    weight_t: (Cin, Cout, K, K, K)   PyTorch ConvTranspose3d weight layout
    returns : (N, Cout, D', H', W')  in x dtype; compute in `compute_dtype`
              (bf16 by default) with f32 MXU accumulation.
    """
    N, Cin, D, H, W = x_ncdhw.shape
    K, s = kernel_size, stride
    p, op = K // 2, s - 1
    Cout = weight_t.shape[1]
    assert weight_t.shape[0] == Cin

    # ---------------- XLA glue: layout, dilation, halo padding ----------------
    x = jnp.transpose(x_ncdhw, (0, 2, 3, 4, 1))           # (N, D, H, W, Cin)
    if s > 1:
        # TODO(synk): replace dense zero-dilation with an s**3 phase decomposition.
        dd, hd, wd = (D - 1) * s + 1, (H - 1) * s + 1, (W - 1) * s + 1
        xz = jnp.zeros((N, dd, hd, wd, Cin), x.dtype)
        x = xz.at[:, ::s, ::s, ::s, :].set(x)
    lo, hi = K - 1 - p, K - 1 - p + op
    xp = jnp.pad(x, ((0, 0), (lo, hi), (lo, hi), (lo, hi), (0, 0)))
    Dp, Hp, Wp = xp.shape[1], xp.shape[2], xp.shape[3]
    Do, Ho, Wo = Dp - (K - 1), Hp - (K - 1), Wp - (K - 1)  # == D*s, H*s, W*s (odd K)

    # ---------------- W tiling + banded per-tap weight ------------------------
    Wt = _pick_w_tile(Wo, Cout)
    nwt = Wo // Wt
    Wpt = Wt + K - 1
    Lout = Wt * Cout
    Cp = Wpt * Cin
    w_band = prepare_deconv_weight(weight_t, K, Wt, compute_dtype)   # (K*K, Cp, Lout)

    # ------------- flat-row activation slab: (N, nwt, Rin, Wpt*Cin) -----------
    if nwt == 1:
        xt = xp[:, None]
    else:
        xt = jnp.stack(
            [xp[:, :, :, wt * Wt:wt * Wt + Wpt, :] for wt in range(nwt)], axis=1)
    xt = xt.reshape(N, nwt, Dp * Hp, Cp)
    Rout = Do * Hp                                   # output rows incl. junk (ho >= Ho)
    Rin = _round_up(Dp * Hp + K - 1, 16)             # shifted windows stay in bounds
    xt = jnp.pad(xt, ((0, 0), (0, 0), (0, Rin - Dp * Hp), (0, 0))).astype(compute_dtype)

    # -------------------------------- Pallas ----------------------------------
    kernel = _make_deconv_kernel(K, Hp, Rout)
    flops = 2 * N * nwt * (K * K) * Rin * Cp * Lout
    bytes_accessed = (xt.size * xt.dtype.itemsize
                      + w_band.size * w_band.dtype.itemsize
                      + N * nwt * Rout * Lout * x_ncdhw.dtype.itemsize)
    out_raw = pl.pallas_call(
        kernel,
        out_shape=jax.ShapeDtypeStruct((N, nwt, Rout, Lout), x_ncdhw.dtype),
        grid=(N, nwt),
        in_specs=[
            pl.BlockSpec((1, 1, Rin, Cp), lambda n, w: (n, w, 0, 0)),
            pl.BlockSpec((K * K, Cp, Lout), lambda n, w: (0, 0, 0)),  # DMA'd once
        ],
        out_specs=pl.BlockSpec((1, 1, Rout, Lout), lambda n, w: (n, w, 0, 0)),
        compiler_params=pltpu.CompilerParams(
            dimension_semantics=("parallel", "parallel"),
            vmem_limit_bytes=32 * 1024 * 1024),
        cost_estimate=pl.CostEstimate(flops=flops, transcendentals=0,
                                      bytes_accessed=bytes_accessed),
    )(xt, w_band)

    # Drop junk rows (ho >= Ho), unfold (Wt, Cout) lanes, back to NCDHW.
    y = out_raw.reshape(N, nwt, Do, Hp, Wt, Cout)[:, :, :, :Ho]
    y = jnp.transpose(y, (0, 5, 2, 3, 1, 4)).reshape(N, Cout, Do, Ho, Wo)
    return y


if __name__ == "__main__":
    # Small shapes consistent with the module's forward.
    N, Cin, Cout = 2, 8, 16
    D = H = W = 8
    K, stride = 3, 1

    key = jax.random.PRNGKey(0)
    kx, kw = jax.random.split(key)
    x = jax.random.normal(kx, (N, Cin, D, H, W), dtype=jnp.float32)
    # Deterministic "parameter init" with PyTorch ConvTranspose3d weight shape.
    weight_t = 0.1 * jax.random.normal(kw, (Cin, Cout, K, K, K), dtype=jnp.float32)

    out = deconv_block_3d(x, weight_t, kernel_size=K, stride=stride,
                          compute_dtype=jnp.bfloat16)
    out = jax.block_until_ready(out)

    # Reference: same transposed conv via lax.conv_general_dilated on the same
    # bf16-rounded operands.  The kernel uses bf16 products + f32 accumulation,
    # so the only difference vs this f32 reference is f32 summation order.
    xr = x.astype(jnp.bfloat16).astype(jnp.float32)
    wr = weight_t.astype(jnp.bfloat16).astype(jnp.float32)
    p, op = K // 2, stride - 1
    w_conv = jnp.transpose(jnp.flip(wr, axis=(2, 3, 4)), (2, 3, 4, 0, 1))
    ref = lax.conv_general_dilated(
        jnp.transpose(xr, (0, 2, 3, 4, 1)), w_conv,
        window_strides=(1, 1, 1),
        padding=[(K - 1 - p, K - 1 - p + op)] * 3,
        lhs_dilation=(stride, stride, stride),
        dimension_numbers=("NDHWC", "DHWIO", "NDHWC"),
        precision=lax.Precision.HIGHEST)
    ref = jnp.transpose(ref, (0, 4, 1, 2, 3))

    assert out.shape == (N, Cout, D * stride, H * stride, W * stride), out.shape
    max_err = float(jnp.max(jnp.abs(out - ref)))
    assert max_err < 5e-3, max_err
    print("KERNEL_OK")
</pallas_src>

<mosaic_0001>
module attributes {stable_mosaic.version = 11 : i64} {
  func.func @kernel(%arg0: i32, %arg1: i32, %arg2: memref<1x1x112x80xbf16, #tpu.memory_space<vmem>>, %arg3: memref<9x80x128xbf16, #tpu.memory_space<vmem>>, %arg4: memref<1x1x80x128xf32, #tpu.memory_space<vmem>>) attributes {dimension_semantics = [#tpu.dimension_semantics<parallel>, #tpu.dimension_semantics<parallel>], iteration_bounds = array<i64: 2, 1>, scalar_prefetch = 0 : i64, scratch_operands = 0 : i64, tpu.core_type = #tpu.core_type<tc>, window_params = [{transform_indices = @transform_0, window_bounds = array<i64: 1, 1, 112, 80>}, {pipeline_mode = #tpu.pipeline_mode<synchronous>, transform_indices = @transform_1, window_bounds = array<i64: 9, 80, 128>}, {transform_indices = @transform_2, window_bounds = array<i64: 1, 1, 80, 128>}]} {
    %c0 = arith.constant 0 : index
    %c0_0 = arith.constant 0 : index
    %c0_1 = arith.constant 0 : index
    %c0_2 = arith.constant 0 : index
    %0 = vector.load %arg2[%c0, %c0_0, %c0_1, %c0_2] : memref<1x1x112x80xbf16, #tpu.memory_space<vmem>>, vector<1x1x112x80xbf16>
    %1 = vector.shape_cast %0 : vector<1x1x112x80xbf16> to vector<112x80xbf16>
    %c0_3 = arith.constant 0 : index
    %c0_4 = arith.constant 0 : index
    %c0_5 = arith.constant 0 : index
    %2 = vector.load %arg3[%c0_3, %c0_4, %c0_5] : memref<9x80x128xbf16, #tpu.memory_space<vmem>>, vector<1x80x128xbf16>
    %3 = vector.shape_cast %2 : vector<1x80x128xbf16> to vector<80x128xbf16>
    %cst = arith.constant dense<0.000000e+00> : vector<112x128xf32>
    %4 = tpu.matmul %1, %3, %cst {dimension_numbers = #tpu.dot_dimension_numbers<[1], [0], [0], [1], [0, 0, 1, 1], [], []>} : vector<112x80xbf16>, vector<80x128xbf16>, vector<112x128xf32> -> vector<112x128xf32>
    %5 = vector.extract_strided_slice %4 {offsets = [0, 0], sizes = [80, 128], strides = [1, 1]} : vector<112x128xf32> to vector<80x128xf32>
    %c1 = arith.constant 1 : index
    %c0_6 = arith.constant 0 : index
    %c0_7 = arith.constant 0 : index
    %6 = vector.load %arg3[%c1, %c0_6, %c0_7] : memref<9x80x128xbf16, #tpu.memory_space<vmem>>, vector<1x80x128xbf16>
    %7 = vector.shape_cast %6 : vector<1x80x128xbf16> to vector<80x128xbf16>
    %cst_8 = arith.constant dense<0.000000e+00> : vector<112x128xf32>
    %8 = tpu.matmul %1, %7, %cst_8 {dimension_numbers = #tpu.dot_dimension_numbers<[1], [0], [0], [1], [0, 0, 1, 1], [], []>} : vector<112x80xbf16>, vector<80x128xbf16>, vector<112x128xf32> -> vector<112x128xf32>
    %9 = vector.extract_strided_slice %8 {offsets = [1, 0], sizes = [80, 128], strides = [1, 1]} : vector<112x128xf32> to vector<80x128xf32>
    %10 = arith.addf %5, %9 : vector<80x128xf32>
    %c2 = arith.constant 2 : index
    %c0_9 = arith.constant 0 : index
    %c0_10 = arith.constant 0 : index
    %11 = vector.load %arg3[%c2, %c0_9, %c0_10] : memref<9x80x128xbf16, #tpu.memory_space<vmem>>, vector<1x80x128xbf16>
    %12 = vector.shape_cast %11 : vector<1x80x128xbf16> to vector<80x128xbf16>
    %cst_11 = arith.constant dense<0.000000e+00> : vector<112x128xf32>
    %13 = tpu.matmul %1, %12, %cst_11 {dimension_numbers = #tpu.dot_dimension_numbers<[1], [0], [0], [1], [0, 0, 1, 1], [], []>} : vector<112x80xbf16>, vector<80x128xbf16>, vector<112x128xf32> -> vector<112x128xf32>
    %14 = vector.extract_strided_slice %13 {offsets = [2, 0], sizes = [80, 128], strides = [1, 1]} : vector<112x128xf32> to vector<80x128xf32>
    %15 = arith.addf %10, %14 : vector<80x128xf32>
    %c3 = arith.constant 3 : index
    %c0_12 = arith.constant 0 : index
    %c0_13 = arith.constant 0 : index
    %16 = vector.load %arg3[%c3, %c0_12, %c0_13] : memref<9x80x128xbf16, #tpu.memory_space<vmem>>, vector<1x80x128xbf16>
    %17 = vector.shape_cast %16 : vector<1x80x128xbf16> to vector<80x128xbf16>
    %cst_14 = arith.constant dense<0.000000e+00> : vector<112x128xf32>
    %18 = tpu.matmul %1, %17, %cst_14 {dimension_numbers = #tpu.dot_dimension_numbers<[1], [0], [0], [1], [0, 0, 1, 1], [], []>} : vector<112x80xbf16>, vector<80x128xbf16>, vector<112x128xf32> -> vector<112x128xf32>
    %19 = vector.extract_strided_slice %18 {offsets = [10, 0], sizes = [80, 128], strides = [1, 1]} : vector<112x128xf32> to vector<80x128xf32>
    %20 = arith.addf %15, %19 : vector<80x128xf32>
    %c4 = arith.constant 4 : index
    %c0_15 = arith.constant 0 : index
    %c0_16 = arith.constant 0 : index
    %21 = vector.load %arg3[%c4, %c0_15, %c0_16] : memref<9x80x128xbf16, #tpu.memory_space<vmem>>, vector<1x80x128xbf16>
    %22 = vector.shape_cast %21 : vector<1x80x128xbf16> to vector<80x128xbf16>
    %cst_17 = arith.constant dense<0.000000e+00> : vector<112x128xf32>
    %23 = tpu.matmul %1, %22, %cst_17 {dimension_numbers = #tpu.dot_dimension_numbers<[1], [0], [0], [1], [0, 0, 1, 1], [], []>} : vector<112x80xbf16>, vector<80x128xbf16>, vector<112x128xf32> -> vector<112x128xf32>
    %24 = vector.extract_strided_slice %23 {offsets = [11, 0], sizes = [80, 128], strides = [1, 1]} : vector<112x128xf32> to vector<80x128xf32>
    %25 = arith.addf %20, %24 : vector<80x128xf32>
    %c5 = arith.constant 5 : index
    %c0_18 = arith.constant 0 : index
    %c0_19 = arith.constant 0 : index
    %26 = vector.load %arg3[%c5, %c0_18, %c0_19] : memref<9x80x128xbf16, #tpu.memory_space<vmem>>, vector<1x80x128xbf16>
    %27 = vector.shape_cast %26 : vector<1x80x128xbf16> to vector<80x128xbf16>
    %cst_20 = arith.constant dense<0.000000e+00> : vector<112x128xf32>
    %28 = tpu.matmul %1, %27, %cst_20 {dimension_numbers = #tpu.dot_dimension_numbers<[1], [0], [0], [1], [0, 0, 1, 1], [], []>} : vector<112x80xbf16>, vector<80x128xbf16>, vector<112x128xf32> -> vector<112x128xf32>
    %29 = vector.extract_strided_slice %28 {offsets = [12, 0], sizes = [80, 128], strides = [1, 1]} : vector<112x128xf32> to vector<80x128xf32>
    %30 = arith.addf %25, %29 : vector<80x128xf32>
    %c6 = arith.constant 6 : index
    %c0_21 = arith.constant 0 : index
    %c0_22 = arith.constant 0 : index
    %31 = vector.load %arg3[%c6, %c0_21, %c0_22] : memref<9x80x128xbf16, #tpu.memory_space<vmem>>, vector<1x80x128xbf16>
    %32 = vector.shape_cast %31 : vector<1x80x128xbf16> to vector<80x128xbf16>
    %cst_23 = arith.constant dense<0.000000e+00> : vector<112x128xf32>
    %33 = tpu.matmul %1, %32, %cst_23 {dimension_numbers = #tpu.dot_dimension_numbers<[1], [0], [0], [1], [0, 0, 1, 1], [], []>} : vector<112x80xbf16>, vector<80x128xbf16>, vector<112x128xf32> -> vector<112x128xf32>
    %34 = vector.extract_strided_slice %33 {offsets = [20, 0], sizes = [80, 128], strides = [1, 1]} : vector<112x128xf32> to vector<80x128xf32>
    %35 = arith.addf %30, %34 : vector<80x128xf32>
    %c7 = arith.constant 7 : index
    %c0_24 = arith.constant 0 : index
    %c0_25 = arith.constant 0 : index
    %36 = vector.load %arg3[%c7, %c0_24, %c0_25] : memref<9x80x128xbf16, #tpu.memory_space<vmem>>, vector<1x80x128xbf16>
    %37 = vector.shape_cast %36 : vector<1x80x128xbf16> to vector<80x128xbf16>
    %cst_26 = arith.constant dense<0.000000e+00> : vector<112x128xf32>
    %38 = tpu.matmul %1, %37, %cst_26 {dimension_numbers = #tpu.dot_dimension_numbers<[1], [0], [0], [1], [0, 0, 1, 1], [], []>} : vector<112x80xbf16>, vector<80x128xbf16>, vector<112x128xf32> -> vector<112x128xf32>
    %39 = vector.extract_strided_slice %38 {offsets = [21, 0], sizes = [80, 128], strides = [1, 1]} : vector<112x128xf32> to vector<80x128xf32>
    %40 = arith.addf %35, %39 : vector<80x128xf32>
    %c8 = arith.constant 8 : index
    %c0_27 = arith.constant 0 : index
    %c0_28 = arith.constant 0 : index
    %41 = vector.load %arg3[%c8, %c0_27, %c0_28] : memref<9x80x128xbf16, #tpu.memory_space<vmem>>, vector<1x80x128xbf16>
    %42 = vector.shape_cast %41 : vector<1x80x128xbf16> to vector<80x128xbf16>
    %cst_29 = arith.constant dense<0.000000e+00> : vector<112x128xf32>
    %43 = tpu.matmul %1, %42, %cst_29 {dimension_numbers = #tpu.dot_dimension_numbers<[1], [0], [0], [1], [0, 0, 1, 1], [], []>} : vector<112x80xbf16>, vector<80x128xbf16>, vector<112x128xf32> -> vector<112x128xf32>
    %44 = vector.extract_strided_slice %43 {offsets = [22, 0], sizes = [80, 128], strides = [1, 1]} : vector<112x128xf32> to vector<80x128xf32>
    %45 = arith.addf %40, %44 : vector<80x128xf32>
    %c0_30 = arith.constant 0 : index
    %c0_31 = arith.constant 0 : index
    %c0_32 = arith.constant 0 : index
    %c0_33 = arith.constant 0 : index
    %46 = vector.load %arg4[%c0_30, %c0_31, %c0_32, %c0_33] : memref<1x1x80x128xf32, #tpu.memory_space<vmem>>, vector<1x1x80x128xf32>
    %47 = vector.shape_cast %46 : vector<1x1x80x128xf32> to vector<80x128xf32>
    %48 = vector.shape_cast %45 : vector<80x128xf32> to vector<1x1x80x128xf32>
    tpu.vector_store %arg4[%c0_30, %c0_31, %c0_32, %c0_33], %48 {strides = array<i32>} : memref<1x1x80x128xf32, #tpu.memory_space<vmem>>, vector<1x1x80x128xf32>,
    return
  }
  func.func @transform_0(%arg0: i32, %arg1: i32) -> (i32, i32, i32, i32) {
    %c0_i32 = arith.constant 0 : i32
    %c0_i32_0 = arith.constant 0 : i32
    %c0_i32_1 = arith.constant 0 : i32
    return %arg0, %arg1, %c0_i32, %c0_i32_0 : i32, i32, i32, i32
  }
  func.func @transform_1(%arg0: i32, %arg1: i32) -> (i32, i32, i32) {
    %c0_i32 = arith.constant 0 : i32
    %c0_i32_0 = arith.constant 0 : i32
    %c0_i32_1 = arith.constant 0 : i32
    %c0_i32_2 = arith.constant 0 : i32
    return %c0_i32, %c0_i32_0, %c0_i32_1 : i32, i32, i32
  }
  func.func @transform_2(%arg0: i32, %arg1: i32) -> (i32, i32, i32, i32) {
    %c0_i32 = arith.constant 0 : i32
    %c0_i32_0 = arith.constant 0 : i32
    %c0_i32_1 = arith.constant 0 : i32
    return %arg0, %arg1, %c0_i32, %c0_i32_0 : i32, i32, i32, i32
  }
}

</mosaic_0001>

<bundles_post_ra>
// kernel: deconv_block_3d.1
= control target key start
LH: loop header
LB: loop body
LE: loop exit
PB: predicated region body
PF: predicated region fallthrough
CT: control target
= control target key end

     0   :  { %s2702_s9 = smov 0   ;;  %s2704_s10 = smov 0   ;;  %s3411_s0 = inlined_call_operand.vmem [shape: bf16[2,1,112,80], index: 0, kind: input, shape index: {}]   ;;  %s3412_s1 = inlined_call_operand.vmem [shape: bf16[9,80,128], index: 1, kind: input, shape index: {}]   ;;  %s3413_s2 = inlined_call_operand.vmem [shape: f32[2,1,80,128], index: 2, kind: output, shape index: {}]  }
   0x1   :  { %s2706_s11 = smov 0  }
   0x2 LB: > { %s24_s12 = sadd.s32 1, %s2679_s10  ;;  %p1921_p0 = scmp.ge.s32.totalorder %s2683_s11, 1  ;;  %s2683_s11 = sphi %s2706_s11, %s12_s11   ;;  %s2679_s10 = sphi %s2704_s10, %s3415_s10   ;;  %s2675_s9 = sphi %s2702_s9, %s3414_s9  }
   0x3   : > { %p26_p1 = scmp.ge.s32.totalorder %s24_s12, 2  ;;  %p132_p2 = scmp.lt.s32.totalorder %s2683_s11, 3 }
   0x5   : > { %s3417_s12 = smov (%p26_p1, %s24_s12), 0  ;;  %p133_p3 = pnand %p1921_p0, %p132_p2 }
   0x6   : > { %v2609_v0 = vld [vmem:[%s3412_s1] sm:$0xff] (!%p133_p3)   ;;  %v2685_v1 = vmov (!%p133_p3), 0.0   ;;  %v2610_v2 = vld [vmem:[%s3412_s1 + $0x8] sm:$0xff] (!%p133_p3)   ;;  %p162_p4 = scmp.lt.s32.totalorder (!%p133_p3), %s2675_s9, 1  ;;  %vm2686_vm0 = vmmov (!%p133_p3), 0   ;;  %v2611_v3 = vld [vmem:[%s3412_s1 + $0x10] sm:$0xff] (!%p133_p3)  }
   0x7   : > { %136 = sbr.rel (%p133_p3) target bundleno = 495 (0x1ef), region = 28  ;;  %2571 = vmatprep.subr.bf16.mxu1 (!%p133_p3), %v2685_v1  ;;  %2229 = vmatprep.subr.bf16.mxu0 (!%p133_p3), %v2685_v1  ;;  %v2612_v4 = vld [vmem:[%s3412_s1 + $0x18] sm:$0xff] (!%p133_p3)   ;;  %v2613_v5 = vld [vmem:[%s3412_s1 + $0x20] sm:$0xff] (!%p133_p3)   ;;  %vm270_vm1 = vcmask (!%p133_p3), 654336   ;;  %v2615_v8 = vld [vmem:[%s3412_s1 + $0x28] sm:$0xff] (!%p133_p3)   ;;  %vm695_vm2 = vcmask (!%p133_p3), 1045504  }
   0x8   : > { %2576 = vmatpush3.bf16.msra.mxu1 (!%p133_p3), %v2609_v0  ;;  %2230 = vmatpush3.bf16.msra.mxu0 (!%p133_p3), %v2609_v0  ;;  %v2619_v9 = vld [vmem:[%s3412_s1 + $0x50] sm:$0xff] (!%p133_p3)   ;;  %v2621_v11 = vld [vmem:[%s3412_s1 + $0x58] sm:$0xff] (!%p133_p3)   ;;  %v2624_v15 = vld [vmem:[%s3412_s1 + $0x60] sm:$0xff] (!%p133_p3)   ;;  %vm515_vm3 = vcmask (!%p133_p3), 1046528   ;;  %vm1054_vm4 = vcmask (!%p133_p3), 1044480   ;;  %vm1234_vm5 = vcmask (!%p133_p3), 1043456  }
   0x9   : > { %2572 = vmatprep.subr.bf16.mxu1 (!%p133_p3), %v2685_v1  ;;  %2231 = vmatprep.subr.bf16.mxu0 (!%p133_p3), %v2685_v1  ;;  %v2618_v10 = vld [vmem:[%s3412_s1 + $0x30] sm:$0xff] (!%p133_p3)   ;;  %v2622_v14 = vld [vmem:[%s3412_s1 + $0x38] sm:$0xff] (!%p133_p3)   ;;  %v2627_v16 = vld [vmem:[%s3412_s1 + $0x40] sm:$0xff] (!%p133_p3)   ;;  %vm1773_vm6 = vcmask (!%p133_p3), 1041408   ;;  %vm1593_vm7 = vcmask (!%p133_p3), 1042432  }
   0xa   : > { %2251 = vmatprep.mubr.msk.bf16.mxu1 (!%p133_p3), %vm2686_vm0, %v2685_v1  ;;  %2239 = vmatprep.mubr.msk.bf16.mxu0 (!%p133_p3), %vm2686_vm0, %v2685_v1  ;;  %v2626_v17 = vld [vmem:[%s3412_s1 + $0x68] sm:$0xff] (!%p133_p3)   ;;  %v2629_v20 = vld [vmem:[%s3412_s1 + $0x70] sm:$0xff] (!%p133_p3)   ;;  %v2632_v23 = vld [vmem:[%s3412_s1 + $0xa0] sm:$0xff] (!%p133_p3)  }
   0xb   : > { %v2630_v21 = vld [vmem:[%s3412_s1 + $0x48] sm:$0xff] (!%p133_p3)   ;;  %v2631_v25 = vld [vmem:[%s3412_s1 + $0x78] sm:$0xff] (!%p133_p3)   ;;  %v2636_v26 = vld [vmem:[%s3412_s1 + $0xb0] sm:$0xff] (!%p133_p3)  }
   0xc   : > { %2577 = vmatpush3.bf16.msra.mxu1 (!%p133_p3), %v2610_v2  ;;  %2232 = vmatpush3.bf16.msra.mxu0 (!%p133_p3), %v2610_v2  ;;  %v2634_v24 = vld [vmem:[%s3412_s1 + $0xa8] sm:$0xff] (!%p133_p3)   ;;  %v2633_v27 = vld [vmem:[%s3412_s1 + $0x80] sm:$0xff] (!%p133_p3)   ;;  %v2638_v28 = vld [vmem:[%s3412_s1 + $0xb8] sm:$0xff] (!%p133_p3)  }
   0xd   : > { %2573 = vmatprep.subr.bf16.mxu1 (!%p133_p3), %v2685_v1  ;;  %2233 = vmatprep.subr.bf16.mxu0 (!%p133_p3), %v2685_v1  ;;  %v2635_v29 = vld [vmem:[%s3412_s1 + $0x88] sm:$0xff] (!%p133_p3)   ;;  %v2640_v30 = vld [vmem:[%s3412_s1 + $0xc0] sm:$0xff] (!%p133_p3)   ;;  %v2637_v31 = vld [vmem:[%s3412_s1 + $0x90] sm:$0xff] (!%p133_p3)  }
   0xe   : > { %s3419_s9 = smov (!%p162_p4, %s2675_s9), 1  ;;  %v2639_v32 = vld [vmem:[%s3412_s1 + $0x98] sm:$0xff]   ;;  %v2642_v33 = vld [vmem:[%s3412_s1 + $0xf0] sm:$0xff]   ;;  %v2641_v35 = vld [vmem:[%s3412_s1 + $0xc8] sm:$0xff]  }
   0xf   : > { %s2581_s19 = smul.u32 56, %s3419_s9  ;;  %v2644_v34 = vld [vmem:[%s3412_s1 + $0xf8] sm:$0xff]   ;;  %v2646_v36 = vld [vmem:[%s3412_s1 + $0x100] sm:$0xff]   ;;  %v2643_v37 = vld [vmem:[%s3412_s1 + $0xd0] sm:$0xff]  }
  0x10   : > { %2578 = vmatpush3.bf16.msra.mxu1 %v2611_v3  ;;  %2234 = vmatpush3.bf16.msra.mxu0 %v2611_v3  ;;  %v2648_v38 = vld [vmem:[%s3412_s1 + $0x108] sm:$0xff]   ;;  %v2645_v39 = vld [vmem:[%s3412_s1 + $0xd8] sm:$0xff]   ;;  %v2650_v40 = vld [vmem:[%s3412_s1 + $0x110] sm:$0xff]   ;;  %s2582_s7 = smul.u32 80, %s3419_s9 }
  0x11   : > { %s2745_s22 = scalar_lea.vmem %s3411_s0, %s2581_s19  ;;  %2574 = vmatprep.subr.bf16.mxu1 %v2685_v1  ;;  %2235 = vmatprep.subr.bf16.mxu0 %v2685_v1  ;;  %v2647_v41 = vld [vmem:[%s3412_s1 + $0xe0] sm:$0xff]   ;;  %v2649_v42 = vld [vmem:[%s3412_s1 + $0xe8] sm:$0xff]   ;;  %v2651_v45 = vld [vmem:[%s3412_s1 + $0x118] sm:$0xff]  }
  0x12   : > { %v2758_v6 = vld [vmem:[%s2745_s22 + $0x18] sm:$0xff]   ;;  %v2761_v7 = vld [vmem:[%s2745_s22] sm:$0xff]   ;;  %v2791_v13 = vld [vmem:[%s2745_s22 + $0x8] sm:$0xff]   ;;  %s3365_s14 = scalar_lea.vmem %s3413_s2, %s2582_s7 }
  0x13   : > { %v2785_v12 = vld [vmem:[%s2745_s22 + $0x20] sm:$0xff]   ;;  %v2816_v18 = vld [vmem:[%s2745_s22 + $0x28] sm:$0xff]   ;;  %v2821_v19 = vld [vmem:[%s2745_s22 + $0x10] sm:$0xff]  }
  0x14   : > { %2579 = vmatpush3.bf16.msra.mxu1 %v2612_v4  ;;  %2236 = vmatpush3.bf16.msra.mxu0 %v2612_v4  ;;  %v2842_v22 = vld [vmem:[%s2745_s22 + $0x30] sm:$0xff]   ;;  %v2652_v43 = vld [vmem:[%s3412_s1 + $0x140] sm:$0xff]   ;;  %v2654_v44 = vld [vmem:[%s3412_s1 + $0x148] sm:$0xff]  }
  0x15   : > { %2575 = vmatprep.subr.bf16.mxu1 %v2685_v1  ;;  %2237 = vmatprep.subr.bf16.mxu0 %v2685_v1  ;;  %v2656_v46 = vld [vmem:[%s3412_s1 + $0x150] sm:$0xff]   ;;  %v2653_v47 = vld [vmem:[%s3412_s1 + $0x120] sm:$0xff]   ;;  %v2658_v48 = vld [vmem:[%s3412_s1 + $0x158] sm:$0xff]  }
  0x16   : > { %v2655_v49 = vld [vmem:[%s3412_s1 + $0x128] sm:$0xff]   ;;  %v2660_v50 = vld [vmem:[%s3412_s1 + $0x160] sm:$0xff]   ;;  %v2657_v51 = vld [vmem:[%s3412_s1 + $0x130] sm:$0xff]  }
  0x17   : > { %v2659_v52 = vld [vmem:[%s3412_s1 + $0x138] sm:$0xff]  }
  0x18   : > { %2580 = vmatpush3.bf16.msra.mxu1 %v2613_v5  ;;  %2238 = vmatpush3.bf16.msra.mxu0 %v2613_v5 }
  0x19   : > { %2267 = vmatprep.subr.bf16.mxu1 %v2685_v1  ;;  %2305 = vmatprep.subr.bf16.mxu0 %v2685_v1 }
  0x1b   : > { %2252 = vmatmul.mubr.msk.bf16.vlgmr.msra.gmra.mrb[0].mxu1 %vm270_vm1, %v2758_v6  ;;  %2240 = vmatmul.mubr.msk.bf16.vlgmr.msra.gmra.mrb[0].mxu0 %vm270_vm1, %v2761_v7 }
  0x1c   : > { %2268 = vmatpush3.bf16.msra.mxu1 %v2615_v8  ;;  %2255 = vmatprep.mubr.msk.bf16.mxu1 %vm2686_vm0, %v2685_v1 }
  0x1d   : > { %2269 = vmatprep.subr.bf16.mxu1 %v2685_v1  ;;  %2306 = vmatpush3.bf16.msra.mxu0 %v2619_v9 }
  0x1e   : > { %2243 = vmatprep.mubr.msk.bf16.mxu0 %vm2686_vm0, %v2685_v1  ;;  %2307 = vmatprep.subr.bf16.mxu0 %v2685_v1 }
  0x20   : > { %2270 = vmatpush3.bf16.msra.mxu1 %v2618_v10 }
  0x21   : > { %2308 = vmatpush3.bf16.msra.mxu0 %v2621_v11  ;;  %2271 = vmatprep.subr.bf16.mxu1 %v2685_v1 }
  0x22   : > { %2309 = vmatprep.subr.bf16.mxu0 %v2685_v1 }
  0x23   : > { %2256 = vmatmul.mubr.msk.bf16.gmra.mrb[4].mxu1 %vm270_vm1, %v2785_v12  ;;  %2244 = vmatmul.mubr.msk.bf16.gmra.mrb[4].mxu0 %vm270_vm1, %v2791_v13 }
  0x24   : > { %2272 = vmatpush3.bf16.msra.mxu1 %v2622_v14  ;;  %2259 = vmatprep.mubr.msk.bf16.mxu1 %vm2686_vm0, %v2685_v1 }
  0x25   : > { %2310 = vmatpush3.bf16.msra.mxu0 %v2624_v15  ;;  %2247 = vmatprep.mubr.msk.bf16.mxu0 %vm2686_vm0, %v2685_v1 }
  0x26   : > { %2311 = vmatprep.subr.bf16.mxu0 %v2685_v1  ;;  %2273 = vmatprep.subr.bf16.mxu1 %v2685_v1 }
  0x28   : > { %2274 = vmatpush3.bf16.msra.mxu1 %v2627_v16 }
  0x29   : > { %2312 = vmatpush3.bf16.msra.mxu0 %v2626_v17  ;;  %2275 = vmatprep.subr.bf16.mxu1 %v2685_v1 }
  0x2a   : > { %2313 = vmatprep.subr.bf16.mxu0 %v2685_v1 }
  0x2b   : > { %2260 = vmatmul.mubr.msk.bf16.gmra.mrb[8].mxu1 %vm270_vm1, %v2816_v18  ;;  %2248 = vmatmul.mubr.msk.bf16.gmra.mrb[8].mxu0 %vm270_vm1, %v2821_v19 }
  0x2c   : > { %2263 = vmatprep.mubr.msk.bf16.mxu1 %vm2686_vm0, %v2685_v1  ;;  %2315 = vmatprep.mubr.msk.bf16.mxu0 %vm2686_vm0, %v2685_v1 }
  0x2d   : > { %2314 = vmatpush3.bf16.msra.mxu0 %v2629_v20  ;;  %2276 = vmatpush3.bf16.msra.mxu1 %v2630_v21 }
  0x2e   : > { %2343 = vmatprep.subr.bf16.mxu1 %v2685_v1  ;;  %2381 = vmatprep.subr.bf16.mxu0 %v2685_v1 }
  0x33   : > { %2264 = vmatmul.mubr.msk.bf16.gmra.mrb[12].mxu1 %vm270_vm1, %v2842_v22  ;;  %2316 = vmatmul.mubr.msk.bf16.vlgmr.msra.gmra.mrb[12].mxu0 %vm270_vm1, %v2761_v7 }
  0x34   : > { %2277 = vmatprep.mubr.msk.bf16.mxu1 %vm2686_vm0, %v2685_v1  ;;  %2319 = vmatprep.mubr.msk.bf16.mxu0 %vm2686_vm0, %v2685_v1 }
  0x35   : > { %2382 = vmatpush3.bf16.msra.mxu0 %v2632_v23 }
  0x36   : > { %2383 = vmatprep.subr.bf16.mxu0 %v2685_v1 }
  0x39   : > { %2384 = vmatpush3.bf16.msra.mxu0 %v2634_v24 }
  0x3a   : > { %2385 = vmatprep.subr.bf16.mxu0 %v2685_v1 }
  0x3b   : > { %2278 = vmatmul.mubr.msk.bf16.vlgmr.msra.gmra.mrb[16].mxu1 %vm270_vm1, %v2761_v7  ;;  %2320 = vmatmul.mubr.msk.bf16.gmra.mrb[16].mxu0 %vm270_vm1, %v2791_v13 }
  0x3c   : > { %2344 = vmatpush3.bf16.msra.mxu1 %v2631_v25  ;;  %2281 = vmatprep.mubr.msk.bf16.mxu1 %vm2686_vm0, %v2685_v1 }
  0x3d   : > { %2323 = vmatprep.mubr.msk.bf16.mxu0 %vm2686_vm0, %v2685_v1  ;;  %2345 = vmatprep.subr.bf16.mxu1 %v2685_v1 }
  0x3e   : > { %2386 = vmatpush3.bf16.msra.mxu0 %v2636_v26 }
  0x3f   : > { %2387 = vmatprep.subr.bf16.mxu0 %v2685_v1 }
  0x40   : > { %2346 = vmatpush3.bf16.msra.mxu1 %v2633_v27 }
  0x41   : > { %2347 = vmatprep.subr.bf16.mxu1 %v2685_v1 }
  0x42   : > { %2388 = vmatpush3.bf16.msra.mxu0 %v2638_v28 }
  0x43   : > { %2282 = vmatmul.mubr.msk.bf16.gmra.mrb[20].mxu1 %vm270_vm1, %v2791_v13  ;;  %2324 = vmatmul.mubr.msk.bf16.gmra.mrb[20].mxu0 %vm270_vm1, %v2821_v19 }
  0x44   : > { %2285 = vmatprep.mubr.msk.bf16.mxu1 %vm2686_vm0, %v2685_v1  ;;  %2327 = vmatprep.mubr.msk.bf16.mxu0 %vm2686_vm0, %v2685_v1 }
  0x45   : > { %2348 = vmatpush3.bf16.msra.mxu1 %v2635_v29  ;;  %2389 = vmatprep.subr.bf16.mxu0 %v2685_v1 }
  0x46   : > { %2349 = vmatprep.subr.bf16.mxu1 %v2685_v1  ;;  %2390 = vmatpush3.bf16.msra.mxu0 %v2640_v30 }
  0x47   : > { %2457 = vmatprep.subr.bf16.mxu0 %v2685_v1 }
  0x49   : > { %2350 = vmatpush3.bf16.msra.mxu1 %v2637_v31 }
  0x4a   : > { %2351 = vmatprep.subr.bf16.mxu1 %v2685_v1 }
  0x4b   : > { %2286 = vmatmul.mubr.msk.bf16.gmra.mrb[24].mxu1 %vm270_vm1, %v2821_v19  ;;  %2328 = vmatmul.mubr.msk.bf16.gmra.mrb[24].mxu0 %vm270_vm1, %v2758_v6 }
  0x4c   : > { %2289 = vmatprep.mubr.msk.bf16.mxu1 %vm2686_vm0, %v2685_v1  ;;  %2331 = vmatprep.mubr.msk.bf16.mxu0 %vm2686_vm0, %v2685_v1 }
  0x4d   : > { %2352 = vmatpush3.bf16.msra.mxu1 %v2639_v32 }
  0x4e   : > { %2419 = vmatprep.subr.bf16.mxu1 %v2685_v1 }
  0x53   : > { %2290 = vmatmul.mubr.msk.bf16.gmra.mrb[28].mxu1 %vm270_vm1, %v2758_v6  ;;  %2332 = vmatmul.mubr.msk.bf16.gmra.mrb[28].mxu0 %vm270_vm1, %v2785_v12 }
  0x54   : > { %2293 = vmatprep.mubr.msk.bf16.mxu1 %vm2686_vm0, %v2685_v1  ;;  %2335 = vmatprep.mubr.msk.bf16.mxu0 %vm2686_vm0, %v2685_v1 }
  0x5b   : > { %2294 = vmatmul.mubr.msk.bf16.gmra.mrb[32].mxu1 %vm270_vm1, %v2785_v12  ;;  %2336 = vmatmul.mubr.msk.bf16.gmra.mrb[32].mxu0 %vm270_vm1, %v2816_v18 }
  0x5c   : > { %2297 = vmatprep.mubr.msk.bf16.mxu1 %vm2686_vm0, %v2685_v1  ;;  %2339 = vmatprep.mubr.msk.bf16.mxu0 %vm2686_vm0, %v2685_v1 }
  0x63   : > { %2298 = vmatmul.mubr.msk.bf16.gmra.mrb[36].mxu1 %vm270_vm1, %v2816_v18  ;;  %2340 = vmatmul.mubr.msk.bf16.gmra.mrb[36].mxu0 %vm270_vm1, %v2842_v22 }
  0x64   : > { %2301 = vmatprep.mubr.msk.bf16.mxu1 %vm2686_vm0, %v2685_v1  ;;  %2391 = vmatprep.mubr.msk.bf16.mxu0 %vm2686_vm0, %v2685_v1 }
  0x6b   : > { %2302 = vmatmul.mubr.msk.bf16.gmra.mrb[40].mxu1 %vm270_vm1, %v2842_v22  ;;  %2392 = vmatmul.mubr.msk.bf16.vlgmr.msra.gmra.mrb[40].mxu0 %vm270_vm1, %v2761_v7 }
  0x6c   : > { %2353 = vmatprep.mubr.msk.bf16.mxu1 %vm2686_vm0, %v2685_v1  ;;  %2395 = vmatprep.mubr.msk.bf16.mxu0 %vm2686_vm0, %v2685_v1 }
  0x6d   : > { %2458 = vmatpush3.bf16.msra.mxu0 %v2642_v33 }
  0x6e   : > { %2459 = vmatprep.subr.bf16.mxu0 %v2685_v1 }
  0x71   : > { %2460 = vmatpush3.bf16.msra.mxu0 %v2644_v34 }
  0x72   : > { %2461 = vmatprep.subr.bf16.mxu0 %v2685_v1 }
  0x73   : > { %2354 = vmatmul.mubr.msk.bf16.vlgmr.msra.gmra.mrb[44].mxu1 %vm270_vm1, %v2761_v7  ;;  %2396 = vmatmul.mubr.msk.bf16.gmra.mrb[44].mxu0 %vm270_vm1, %v2791_v13 }
  0x74   : > { %2420 = vmatpush3.bf16.msra.mxu1 %v2641_v35  ;;  %2357 = vmatprep.mubr.msk.bf16.mxu1 %vm2686_vm0, %v2685_v1 }
  0x75   : > { %2399 = vmatprep.mubr.msk.bf16.mxu0 %vm2686_vm0, %v2685_v1  ;;  %2421 = vmatprep.subr.bf16.mxu1 %v2685_v1 }
  0x76   : > { %2462 = vmatpush3.bf16.msra.mxu0 %v2646_v36 }
  0x77   : > { %2463 = vmatprep.subr.bf16.mxu0 %v2685_v1 }
  0x78   : > { %2422 = vmatpush3.bf16.msra.mxu1 %v2643_v37 }
  0x79   : > { %2423 = vmatprep.subr.bf16.mxu1 %v2685_v1 }
  0x7a   : > { %2464 = vmatpush3.bf16.msra.mxu0 %v2648_v38 }
  0x7b   : > { %2358 = vmatmul.mubr.msk.bf16.gmra.mrb[48].mxu1 %vm270_vm1, %v2791_v13  ;;  %2400 = vmatmul.mubr.msk.bf16.gmra.mrb[48].mxu0 %vm270_vm1, %v2821_v19 }
  0x7c   : > { %2361 = vmatprep.mubr.msk.bf16.mxu1 %vm2686_vm0, %v2685_v1  ;;  %2403 = vmatprep.mubr.msk.bf16.mxu0 %vm2686_vm0, %v2685_v1 }
  0x7d   : > { %2424 = vmatpush3.bf16.msra.mxu1 %v2645_v39  ;;  %2465 = vmatprep.subr.bf16.mxu0 %v2685_v1 }
  0x7e   : > { %2425 = vmatprep.subr.bf16.mxu1 %v2685_v1  ;;  %2466 = vmatpush3.bf16.msra.mxu0 %v2650_v40 }
  0x7f   : > { %2533 = vmatprep.subr.bf16.mxu0 %v2685_v1 }
  0x81   : > { %2426 = vmatpush3.bf16.msra.mxu1 %v2647_v41 }
  0x82   : > { %2427 = vmatprep.subr.bf16.mxu1 %v2685_v1 }
  0x83   : > { %2362 = vmatmul.mubr.msk.bf16.gmra.mrb[52].mxu1 %vm270_vm1, %v2821_v19  ;;  %2404 = vmatmul.mubr.msk.bf16.gmra.mrb[52].mxu0 %vm270_vm1, %v2758_v6 }
  0x84   : > { %2365 = vmatprep.mubr.msk.bf16.mxu1 %vm2686_vm0, %v2685_v1  ;;  %2407 = vmatprep.mubr.msk.bf16.mxu0 %vm2686_vm0, %v2685_v1 }
  0x85   : > { %2428 = vmatpush3.bf16.msra.mxu1 %v2649_v42 }
  0x86   : > { %2495 = vmatprep.subr.bf16.mxu1 %v2685_v1 }
  0x8b   : > { %2366 = vmatmul.mubr.msk.bf16.gmra.mrb[56].mxu1 %vm270_vm1, %v2758_v6  ;;  %2408 = vmatmul.mubr.msk.bf16.gmra.mrb[56].mxu0 %vm270_vm1, %v2785_v12 }
  0x8c   : > { %2369 = vmatprep.mubr.msk.bf16.mxu1 %vm2686_vm0, %v2685_v1  ;;  %2411 = vmatprep.mubr.msk.bf16.mxu0 %vm2686_vm0, %v2685_v1 }
  0x93   : > { %2370 = vmatmul.mubr.msk.bf16.gmra.mrb[60].mxu1 %vm270_vm1, %v2785_v12  ;;  %2412 = vmatmul.mubr.msk.bf16.gmra.mrb[60].mxu0 %vm270_vm1, %v2816_v18 }
  0x94   : > { %2373 = vmatprep.mubr.msk.bf16.mxu1 %vm2686_vm0, %v2685_v1  ;;  %2415 = vmatprep.mubr.msk.bf16.mxu0 %vm2686_vm0, %v2685_v1 }
  0x9b   : > { %2374 = vmatmul.mubr.msk.bf16.gmra.mrb[64].mxu1 %vm270_vm1, %v2816_v18  ;;  %2416 = vmatmul.mubr.msk.bf16.gmra.mrb[64].mxu0 %vm270_vm1, %v2842_v22 }
  0x9c   : > { %2377 = vmatprep.mubr.msk.bf16.mxu1 %vm2686_vm0, %v2685_v1  ;;  %2467 = vmatprep.mubr.msk.bf16.mxu0 %vm2686_vm0, %v2685_v1 }
  0xa3   : > { %2378 = vmatmul.mubr.msk.bf16.gmra.mrb[68].mxu1 %vm270_vm1, %v2842_v22  ;;  %2468 = vmatmul.mubr.msk.bf16.vlgmr.msra.gmra.mrb[68].mxu0 %vm270_vm1, %v2761_v7 }
  0xa4   : > { %2429 = vmatprep.mubr.msk.bf16.mxu1 %vm2686_vm0, %v2685_v1  ;;  %2471 = vmatprep.mubr.msk.bf16.mxu0 %vm2686_vm0, %v2685_v1 }
  0xa5   : > { %2534 = vmatpush3.bf16.msra.mxu0 %v2652_v43 }
  0xa6   : > { %2535 = vmatprep.subr.bf16.mxu0 %v2685_v1 }
  0xa9   : > { %2536 = vmatpush3.bf16.msra.mxu0 %v2654_v44 }
  0xaa   : > { %2537 = vmatprep.subr.bf16.mxu0 %v2685_v1 }
  0xab   : > { %2430 = vmatmul.mubr.msk.bf16.vlgmr.msra.gmra.mrb[72].mxu1 %vm270_vm1, %v2761_v7  ;;  %2472 = vmatmul.mubr.msk.bf16.gmra.mrb[72].mxu0 %vm270_vm1, %v2791_v13 }
  0xac   : > { %2496 = vmatpush3.bf16.msra.mxu1 %v2651_v45  ;;  %2433 = vmatprep.mubr.msk.bf16.mxu1 %vm2686_vm0, %v2685_v1 }
  0xad   : > { %2475 = vmatprep.mubr.msk.bf16.mxu0 %vm2686_vm0, %v2685_v1  ;;  %2497 = vmatprep.subr.bf16.mxu1 %v2685_v1 }
  0xae   : > { %2538 = vmatpush3.bf16.msra.mxu0 %v2656_v46 }
  0xaf   : > { %2539 = vmatprep.subr.bf16.mxu0 %v2685_v1 }
  0xb0   : > { %2498 = vmatpush3.bf16.msra.mxu1 %v2653_v47 }
  0xb1   : > { %2499 = vmatprep.subr.bf16.mxu1 %v2685_v1 }
  0xb2   : > { %2540 = vmatpush3.bf16.msra.mxu0 %v2658_v48 }
  0xb3   : > { %2434 = vmatmul.mubr.msk.bf16.gmra.mrb[76].mxu1 %vm270_vm1, %v2791_v13  ;;  %2476 = vmatmul.mubr.msk.bf16.gmra.mrb[76].mxu0 %vm270_vm1, %v2821_v19 }
  0xb4   : > { %2437 = vmatprep.mubr.msk.bf16.mxu1 %vm2686_vm0, %v2685_v1  ;;  %2479 = vmatprep.mubr.msk.bf16.mxu0 %vm2686_vm0, %v2685_v1 }
  0xb5   : > { %2500 = vmatpush3.bf16.msra.mxu1 %v2655_v49  ;;  %2541 = vmatprep.subr.bf16.mxu0 %v2685_v1 }
  0xb6   : > { %2501 = vmatprep.subr.bf16.mxu1 %v2685_v1  ;;  %2542 = vmatpush3.bf16.msra.mxu0 %v2660_v50 }
  0xb9   : > { %2502 = vmatpush3.bf16.msra.mxu1 %v2657_v51 }
  0xba   : > { %2503 = vmatprep.subr.bf16.mxu1 %v2685_v1 }
  0xbb   : > { %2438 = vmatmul.mubr.msk.bf16.gmra.mrb[80].mxu1 %vm270_vm1, %v2821_v19  ;;  %2480 = vmatmul.mubr.msk.bf16.gmra.mrb[80].mxu0 %vm270_vm1, %v2758_v6 }
  0xbc   : > { %2441 = vmatprep.mubr.msk.bf16.mxu1 %vm2686_vm0, %v2685_v1  ;;  %2483 = vmatprep.mubr.msk.bf16.mxu0 %vm2686_vm0, %v2685_v1 }
  0xbd   : > { %2504 = vmatpush3.bf16.msra.mxu1 %v2659_v52 }
  0xc3   : > { %2442 = vmatmul.mubr.msk.bf16.gmra.mrb[84].mxu1 %vm270_vm1, %v2758_v6  ;;  %2484 = vmatmul.mubr.msk.bf16.gmra.mrb[84].mxu0 %vm270_vm1, %v2785_v12 }
  0xc4   : > { %2445 = vmatprep.mubr.msk.bf16.mxu1 %vm2686_vm0, %v2685_v1  ;;  %2487 = vmatprep.mubr.msk.bf16.mxu0 %vm2686_vm0, %v2685_v1 }
  0xcb   : > { %2446 = vmatmul.mubr.msk.bf16.gmra.mrb[88].mxu1 %vm270_vm1, %v2785_v12  ;;  %2488 = vmatmul.mubr.msk.bf16.gmra.mrb[88].mxu0 %vm270_vm1, %v2816_v18 }
  0xcc   : > { %2449 = vmatprep.mubr.msk.bf16.mxu1 %vm2686_vm0, %v2685_v1  ;;  %2491 = vmatprep.mubr.msk.bf16.mxu0 %vm2686_vm0, %v2685_v1 }
  0xd3   : > { %2450 = vmatmul.mubr.msk.bf16.gmra.mrb[92].mxu1 %vm270_vm1, %v2816_v18  ;;  %2492 = vmatmul.mubr.msk.bf16.gmra.mrb[92].mxu0 %vm270_vm1, %v2842_v22 }
  0xd4   : > { %2453 = vmatprep.mubr.msk.bf16.mxu1 %vm2686_vm0, %v2685_v1  ;;  %2543 = vmatprep.mubr.msk.bf16.mxu0 %vm2686_vm0, %v2685_v1 }
  0xdb   : > { %2454 = vmatmul.mubr.msk.bf16.gmra.mrb[96].mxu1 %vm270_vm1, %v2842_v22  ;;  %2544 = vmatmul.mubr.msk.bf16.vlgmr.msra.gmra.mrb[96].mxu0 %vm270_vm1, %v2761_v7 }
  0xdc   : > { %2505 = vmatprep.mubr.msk.bf16.mxu1 %vm2686_vm0, %v2685_v1  ;;  %2547 = vmatprep.mubr.msk.bf16.mxu0 %vm2686_vm0, %v2685_v1 }
  0xe3   : > { %2506 = vmatmul.mubr.msk.bf16.vlgmr.msra.gmra.mrb[100].mxu1 %vm270_vm1, %v2761_v7  ;;  %2548 = vmatmul.mubr.msk.bf16.gmra.mrb[100].mxu0 %vm270_vm1, %v2791_v13 }
  0xe4   : > { %2509 = vmatprep.mubr.msk.bf16.mxu1 %vm2686_vm0, %v2685_v1  ;;  %2551 = vmatprep.mubr.msk.bf16.mxu0 %vm2686_vm0, %v2685_v1 }
  0xeb   : > { %2510 = vmatmul.mubr.msk.bf16.gmra.mrb[104].mxu1 %vm270_vm1, %v2791_v13  ;;  %2552 = vmatmul.mubr.msk.bf16.gmra.mrb[104].mxu0 %vm270_vm1, %v2821_v19 }
  0xec   : > { %2513 = vmatprep.mubr.msk.bf16.mxu1 %vm2686_vm0, %v2685_v1  ;;  %2555 = vmatprep.mubr.msk.bf16.mxu0 %vm2686_vm0, %v2685_v1 }
  0xee   : > { %v3154_v53 = vpop.f32.mrb[0].mxu1  ;;  %v3156_v54 = vpop.f32.mrb[0].mxu0 }
  0xef   : > { %v2253_v55 = vpop.f32.mrb[1].mxu1  ;;  %v2241_v56 = vpop.f32.mrb[1].mxu0 }
  0xf0   : > { %v3158_v57 = vpop.f32.mrb[2].mxu1  ;;  %v3160_v58 = vpop.f32.mrb[2].mxu0 }
  0xf1   : > { %v2254_v59 = vpop.f32.mrb[3].mxu1  ;;  %v2242_v60 = vpop.f32.mrb[3].mxu0 }
  0xf3   : > { %2514 = vmatmul.mubr.msk.bf16.gmra.mrb[108].mxu1 %vm270_vm1, %v2821_v19  ;;  %2556 = vmatmul.mubr.msk.bf16.gmra.mrb[108].mxu0 %vm270_vm1, %v2758_v6 }
  0xf4   : > { %2517 = vmatprep.mubr.msk.bf16.mxu1 %vm2686_vm0, %v2685_v1  ;;  %2559 = vmatprep.mubr.msk.bf16.mxu0 %vm2686_vm0, %v2685_v1 }
  0xf6   : > { %v3170_v61 = vpop.f32.mrb[4].mxu1  ;;  %v3172_v62 = vpop.f32.mrb[4].mxu0 }
  0xf7   : > { %v2257_v63 = vpop.f32.mrb[5].mxu1  ;;  %v2245_v0 = vpop.f32.mrb[5].mxu0 }
  0xf8   : > { %v3174_v2 = vpop.f32.mrb[6].mxu1  ;;  %v3176_v3 = vpop.f32.mrb[6].mxu0 }
  0xf9   : > { %v2258_v4 = vpop.f32.mrb[7].mxu1  ;;  %v2246_v5 = vpop.f32.mrb[7].mxu0 }
  0xfb   : > { %2518 = vmatmul.mubr.msk.bf16.gmra.mrb[112].mxu1 %vm270_vm1, %v2758_v6  ;;  %2560 = vmatmul.mubr.msk.bf16.gmra.mrb[112].mxu0 %vm270_vm1, %v2785_v12 }
  0xfc   : > { %2521 = vmatprep.mubr.msk.bf16.mxu1 %vm2686_vm0, %v2685_v1  ;;  %2563 = vmatprep.mubr.msk.bf16.mxu0 %vm2686_vm0, %v2685_v1 }
  0xfe   : > { %v366_v7 = vpop.f32.mrb[8].mxu1  ;;  %v3186_v8 = vpop.f32.mrb[8].mxu0 }
  0xff   : > { %v2261_v9 = vpop.f32.mrb[9].mxu1  ;;  %v2249_v10 = vpop.f32.mrb[9].mxu0 }
 0x100   : > { %v368_v11 = vpop.f32.mrb[10].mxu1  ;;  %v3188_v13 = vpop.f32.mrb[10].mxu0 }
 0x101   : > { %v2262_v14 = vpop.f32.mrb[11].mxu1  ;;  %v2250_v15 = vpop.f32.mrb[11].mxu0 }
 0x103   : > { %2522 = vmatmul.mubr.msk.bf16.gmra.mrb[116].mxu1 %vm270_vm1, %v2785_v12  ;;  %2564 = vmatmul.mubr.msk.bf16.gmra.mrb[116].mxu0 %vm270_vm1, %v2816_v18 }
 0x104   : > { %2525 = vmatprep.mubr.msk.bf16.mxu1 %vm2686_vm0, %v2685_v1  ;;  %2567 = vmatprep.mubr.msk.bf16.mxu0 %vm2686_vm0, %v2685_v1 }
 0x106   : > { %v372_v6 = vpop.f32.mrb[12].mxu1  ;;  %v632_v16 = vpop.f32.mrb[12].mxu0 }
 0x107   : > { %v2265_v17 = vpop.f32.mrb[13].mxu1  ;;  %v696_v19 = vrot.slane %v632_v16, 2  ;;  %v2317_v20 = vpop.f32.mrb[13].mxu0 }
 0x108   : > { %v374_v21 = vpop.f32.mrb[14].mxu1  ;;  %v635_v23 = vpop.f32.mrb[14].mxu0 }
 0x109   : > { %v2266_v24 = vpop.f32.mrb[15].mxu1  ;;  %v697_v25 = vrot.slane %v635_v23, 2  ;;  %v2318_v12 = vpop.f32.mrb[15].mxu0 }
 0x10b   : > { %2526 = vmatmul.mubr.msk.bf16.gmra.mrb[120].mxu1 %vm270_vm1, %v2816_v18  ;;  %2568 = vmatmul.mubr.msk.bf16.gmra.mrb[120].mxu0 %vm270_vm1, %v2842_v22  ;;  %v698_v26 = vsel %vm695_vm2, %v696_v19, %v697_v25 }
 0x10c   : > { %2529 = vmatprep.mubr.msk.bf16.mxu1 %vm2686_vm0, %v2685_v1 }
 0x10e   : > { %v452_v27 = vpop.f32.mrb[16].mxu1  ;;  %v640_v28 = vpop.f32.mrb[16].mxu0 }
 0x10f   : > { %v2279_v29 = vpop.f32.mrb[17].mxu1  ;;  %v699_v30 = vrot.slane %v640_v28, 2  ;;  %v2321_v31 = vpop.f32.mrb[17].mxu0  ;;  %v516_v34 = vrot.slane %v452_v27, 1 }
 0x110   : > { %v455_v32 = vpop.f32.mrb[18].mxu1  ;;  %v643_v33 = vpop.f32.mrb[18].mxu0 }
 0x111   : > { %v517_v35 = vrot.slane %v455_v32, 1  ;;  %v2280_v36 = vpop.f32.mrb[19].mxu1  ;;  %v700_v18 = vsel %vm695_vm2, %v697_v25, %v699_v30  ;;  %v701_v37 = vrot.slane %v643_v33, 2  ;;  %v2322_v38 = vpop.f32.mrb[19].mxu0 }
 0x113   : > { %v518_v39 = vsel %vm515_vm3, %v516_v34, %v517_v35  ;;  %2530 = vmatmul.mubr.msk.bf16.gmra.mrb[124].mxu1 %vm270_vm1, %v2842_v22  ;;  %v702_v1 = vsel %vm695_vm2, %v699_v30, %v701_v37 }
 0x114   : > { %v547_v40 = vadd.f32 %v518_v39, %v3156_v54 }
 0x116   : > { %v460_v41 = vpop.f32.mrb[20].mxu1  ;;  %v648_v42 = vpop.f32.mrb[20].mxu0  ;;  %v3211_v43 = vadd.f32 %v698_v26, %v547_v40 }
 0x117   : > { %v519_v44 = vrot.slane %v460_v41, 1  ;;  %v2283_v45 = vpop.f32.mrb[21].mxu1  ;;  %v703_v46 = vrot.slane %v648_v42, 2  ;;  %v2325_v47 = vpop.f32.mrb[21].mxu0 }
 0x118   : > { %v463_v48 = vpop.f32.mrb[22].mxu1  ;;  %v651_v49 = vpop.f32.mrb[22].mxu0 }
 0x119   : > { %v520_v50 = vsel %vm515_vm3, %v517_v35, %v519_v44  ;;  %v521_v51 = vrot.slane %v463_v48, 1  ;;  %v2284_v52 = vpop.f32.mrb[23].mxu1  ;;  %v704_v22 = vsel %vm695_vm2, %v701_v37, %v703_v46  ;;  %v705_v55 = vrot.slane %v651_v49, 2  ;;  %v2326_v56 = vpop.f32.mrb[23].mxu0 }
 0x11a   : > { %v548_v54 = vadd.f32 %v520_v50, %v3160_v58 }
 0x11b   : > { %v522_v59 = vsel %vm515_vm3, %v519_v44, %v521_v51  ;;  %v706_v60 = vsel %vm695_vm2, %v703_v46, %v705_v55 }
 0x11c   : > { %v549_v63 = vadd.f32 %v522_v59, %v3172_v62  ;;  %v3219_v0 = vadd.f32 %v700_v18, %v548_v54 }
 0x11e   : > { %v468_v4 = vpop.f32.mrb[24].mxu1  ;;  %v656_v5 = vpop.f32.mrb[24].mxu0  ;;  %v3221_v7 = vadd.f32 %v702_v1, %v549_v63 }
 0x11f   : > { %v523_v9 = vrot.slane %v468_v4, 1  ;;  %v2287_v10 = vpop.f32.mrb[25].mxu1  ;;  %v707_v11 = vrot.slane %v656_v5, 2  ;;  %v2329_v14 = vpop.f32.mrb[25].mxu0 }
 0x120   : > { %v471_v15 = vpop.f32.mrb[26].mxu1  ;;  %v659_v6 = vpop.f32.mrb[26].mxu0 }
 0x121   : > { %v524_v58 = vsel %vm515_vm3, %v521_v51, %v523_v9  ;;  %v525_v16 = vrot.slane %v471_v15, 1  ;;  %v2288_v17 = vpop.f32.mrb[27].mxu1  ;;  %v708_v19 = vsel %vm695_vm2, %v705_v55, %v707_v11  ;;  %v709_v20 = vrot.slane %v659_v6, 2  ;;  %v2330_v62 = vpop.f32.mrb[27].mxu0 }
 0x122   : > { %v550_v21 = vadd.f32 %v524_v58, %v3176_v3 }
 0x123   : > { %v526_v23 = vsel %vm515_vm3, %v523_v9, %v525_v16  ;;  %v710_v24 = vsel %vm695_vm2, %v707_v11, %v709_v20 }
 0x124   : > { %v551_v25 = vadd.f32 %v526_v23, %v3186_v8  ;;  %v3229_v12 = vadd.f32 %v704_v22, %v550_v21 }
 0x126   : > { %v476_v26 = vpop.f32.mrb[28].mxu1  ;;  %v664_v27 = vpop.f32.mrb[28].mxu0  ;;  %v3231_v28 = vadd.f32 %v706_v60, %v551_v25 }
 0x127   : > { %v527_v29 = vrot.slane %v476_v26, 1  ;;  %v2291_v30 = vpop.f32.mrb[29].mxu1  ;;  %v711_v31 = vrot.slane %v664_v27, 2  ;;  %v2333_v32 = vpop.f32.mrb[29].mxu0 }
 0x128   : > { %v479_v33 = vpop.f32.mrb[30].mxu1  ;;  %v667_v34 = vpop.f32.mrb[30].mxu0 }
 0x129   : > { %v528_v3 = vsel %vm515_vm3, %v525_v16, %v527_v29  ;;  %v529_v35 = vrot.slane %v479_v33, 1  ;;  %v2292_v36 = vpop.f32.mrb[31].mxu1  ;;  %v712_v18 = vsel %vm695_vm2, %v709_v20, %v711_v31  ;;  %v713_v37 = vrot.slane %v667_v34, 2  ;;  %v2334_v8 = vpop.f32.mrb[31].mxu0 }
 0x12a   : > { %v552_v38 = vadd.f32 %v528_v3, %v3188_v13 }
 0x12b   : > { %v530_v39 = vsel %vm515_vm3, %v527_v29, %v529_v35  ;;  %v714_v1 = vsel %vm695_vm2, %v711_v31, %v713_v37 }
 0x12c   : > { %v553_v40 = vadd.f32 %v530_v39, %v3154_v53  ;;  %v3239_v41 = vadd.f32 %v708_v19, %v552_v38 }
 0x12e   : > { %v484_v42 = vpop.f32.mrb[32].mxu1  ;;  %v672_v44 = vpop.f32.mrb[32].mxu0  ;;  %v3241_v45 = vadd.f32 %v710_v24, %v553_v40 }
 0x12f   : > { %v531_v46 = vrot.slane %v484_v42, 1  ;;  %v2295_v47 = vpop.f32.mrb[33].mxu1  ;;  %v715_v48 = vrot.slane %v672_v44, 2  ;;  %v2337_v49 = vpop.f32.mrb[33].mxu0 }
 0x130   : > { %v487_v50 = vpop.f32.mrb[34].mxu1  ;;  %v675_v51 = vpop.f32.mrb[34].mxu0 }
 0x131   : > { %v532_v13 = vsel %vm515_vm3, %v529_v35, %v531_v46  ;;  %v533_v52 = vrot.slane %v487_v50, 1  ;;  %v2296_v22 = vpop.f32.mrb[35].mxu1  ;;  %v716_v55 = vsel %vm695_vm2, %v713_v37, %v715_v48  ;;  %v2338_v56 = vpop.f32.mrb[35].mxu0 }
 0x132   : > { %v554_v53 = vadd.f32 %v532_v13, %v3158_v57 }
 0x133   : > { %v534_v54 = vsel %vm515_vm3, %v531_v46, %v533_v52 }
 0x134   : > { %v555_v59 = vadd.f32 %v534_v54, %v3170_v61  ;;  %v3248_v60 = vadd.f32 %v712_v18, %v554_v53 }
 0x136   : > { %v492_v63 = vpop.f32.mrb[36].mxu1  ;;  %v679_v4 = vpop.f32.mrb[36].mxu0  ;;  %v3250_v5 = vadd.f32 %v714_v1, %v555_v59 }
 0x137   : > { %v535_v9 = vrot.slane %v492_v63, 1  ;;  %v2299_v10 = vpop.f32.mrb[37].mxu1  ;;  %v2341_v11 = vpop.f32.mrb[37].mxu0 }
 0x138   : > { %v495_v14 = vpop.f32.mrb[38].mxu1  ;;  %v681_v15 = vpop.f32.mrb[38].mxu0 }
 0x139   : > { %v536_v6 = vsel %vm515_vm3, %v533_v52, %v535_v9  ;;  %v2300_v58 = vpop.f32.mrb[39].mxu1  ;;  %v2342_v16 = vpop.f32.mrb[39].mxu0 }
 0x13a   : > { %v556_v57 = vadd.f32 %v536_v6, %v3174_v2 }
 0x13c   : > { %v3254_v17 = vadd.f32 %v716_v55, %v556_v57 }
 0x13e   : > { %v499_v61 = vpop.f32.mrb[40].mxu1  ;;  %v991_v19 = vpop.f32.mrb[40].mxu0 }
 0x13f   : > { %v2303_v20 = vpop.f32.mrb[41].mxu1  ;;  %v2393_v62 = vpop.f32.mrb[41].mxu0 }
 0x140   : > { %v501_v21 = vpop.f32.mrb[42].mxu1  ;;  %v993_v23 = vpop.f32.mrb[42].mxu0 }
 0x141   : > { %v2304_v24 = vpop.f32.mrb[43].mxu1  ;;  %v2394_v25 = vpop.f32.mrb[43].mxu0  ;;  %v1055_v26 = vrot.slane %v993_v23, 3 }
 0x146   : > { %v812_v27 = vpop.f32.mrb[44].mxu1  ;;  %v998_v29 = vpop.f32.mrb[44].mxu0 }
 0x147   : > { %v2355_v30 = vpop.f32.mrb[45].mxu1  ;;  %v1056_v31 = vrot.slane %v998_v29, 3  ;;  %v2397_v32 = vpop.f32.mrb[45].mxu0 }
 0x148   : > { %v814_v33 = vpop.f32.mrb[46].mxu1  ;;  %v1001_v34 = vpop.f32.mrb[46].mxu0 }
 0x149   : > { %v2356_v2 = vpop.f32.mrb[47].mxu1  ;;  %v1057_v3 = vsel %vm1054_vm4, %v1055_v26, %v1056_v31  ;;  %v1058_v35 = vrot.slane %v1001_v34, 3  ;;  %v2398_v36 = vpop.f32.mrb[47].mxu0  ;;  %v875_v38 = vrot.slane %v814_v33, 2 }
 0x14b   : > { %v1059_v18 = vsel %vm1054_vm4, %v1056_v31, %v1058_v35 }
 0x14e   : > { %v819_v37 = vpop.f32.mrb[48].mxu1  ;;  %v1006_v8 = vpop.f32.mrb[48].mxu0 }
 0x14f   : > { %v876_v39 = vrot.slane %v819_v37, 2  ;;  %v2359_v1 = vpop.f32.mrb[49].mxu1  ;;  %v1060_v40 = vrot.slane %v1006_v8, 3  ;;  %v2401_v42 = vpop.f32.mrb[49].mxu0 }
 0x150   : > { %v822_v44 = vpop.f32.mrb[50].mxu1  ;;  %v1009_v46 = vpop.f32.mrb[50].mxu0 }
 0x151   : > { %v877_v47 = vsel %vm695_vm2, %v875_v38, %v876_v39  ;;  %v878_v48 = vrot.slane %v822_v44, 2  ;;  %v2360_v49 = vpop.f32.mrb[51].mxu1  ;;  %v1061_v50 = vsel %vm1054_vm4, %v1058_v35, %v1060_v40  ;;  %v1062_v51 = vrot.slane %v1009_v46, 3  ;;  %v2402_v13 = vpop.f32.mrb[51].mxu0 }
 0x152   : > { %v906_v52 = vadd.f32 %v877_v47, %v3211_v43 }
 0x153   : > { %v879_v22 = vsel %vm695_vm2, %v876_v39, %v878_v48  ;;  %v1063_v55 = vsel %vm1054_vm4, %v1060_v40, %v1062_v51 }
 0x154   : > { %v907_v56 = vadd.f32 %v879_v22, %v3219_v0  ;;  %v3264_v53 = vadd.f32 %v1057_v3, %v906_v52 }
 0x156   : > { %v827_v54 = vpop.f32.mrb[52].mxu1  ;;  %v1014_v59 = vpop.f32.mrb[52].mxu0  ;;  %v3266_v63 = vadd.f32 %v1059_v18, %v907_v56 }
 0x157   : > { %v880_v4 = vrot.slane %v827_v54, 2  ;;  %v2363_v9 = vpop.f32.mrb[53].mxu1  ;;  %v1064_v10 = vrot.slane %v1014_v59, 3  ;;  %v2405_v11 = vpop.f32.mrb[53].mxu0 }
 0x158   : > { %v830_v14 = vpop.f32.mrb[54].mxu1  ;;  %v1017_v15 = vpop.f32.mrb[54].mxu0 }
 0x159   : > { %v881_v43 = vsel %vm695_vm2, %v878_v48, %v880_v4  ;;  %v882_v6 = vrot.slane %v830_v14, 2  ;;  %v2364_v58 = vpop.f32.mrb[55].mxu1  ;;  %v1065_v16 = vsel %vm1054_vm4, %v1062_v51, %v1064_v10  ;;  %v1066_v57 = vrot.slane %v1017_v15, 3  ;;  %v2406_v0 = vpop.f32.mrb[55].mxu0 }
 0x15a   : > { %v908_v61 = vadd.f32 %v881_v43, %v3221_v7 }
 0x15b   : > { %v883_v19 = vsel %vm695_vm2, %v880_v4, %v882_v6  ;;  %v1067_v20 = vsel %vm1054_vm4, %v1064_v10, %v1066_v57 }
 0x15c   : > { %v909_v62 = vadd.f32 %v883_v19, %v3229_v12  ;;  %v3274_v21 = vadd.f32 %v1061_v50, %v908_v61 }
 0x15e   : > { %v835_v23 = vpop.f32.mrb[56].mxu1  ;;  %v1022_v24 = vpop.f32.mrb[56].mxu0  ;;  %v3276_v25 = vadd.f32 %v1063_v55, %v909_v62 }
 0x15f   : > { %v884_v26 = vrot.slane %v835_v23, 2  ;;  %v2367_v27 = vpop.f32.mrb[57].mxu1  ;;  %v1068_v29 = vrot.slane %v1022_v24, 3  ;;  %v2409_v30 = vpop.f32.mrb[57].mxu0 }
 0x160   : > { %v838_v31 = vpop.f32.mrb[58].mxu1  ;;  %v1025_v32 = vpop.f32.mrb[58].mxu0 }
 0x161   : > { %v885_v7 = vsel %vm695_vm2, %v882_v6, %v884_v26  ;;  %v886_v33 = vrot.slane %v838_v31, 2  ;;  %v2368_v34 = vpop.f32.mrb[59].mxu1  ;;  %v1069_v2 = vsel %vm1054_vm4, %v1066_v57, %v1068_v29  ;;  %v1070_v3 = vrot.slane %v1025_v32, 3  ;;  %v2410_v12 = vpop.f32.mrb[59].mxu0 }
 0x162   : > { %v910_v35 = vadd.f32 %v885_v7, %v3231_v28 }
 0x163   : > { %v887_v36 = vsel %vm695_vm2, %v884_v26, %v886_v33  ;;  %v1071_v18 = vsel %vm1054_vm4, %v1068_v29, %v1070_v3 }
 0x164   : > { %v911_v37 = vadd.f32 %v887_v36, %v3239_v41  ;;  %v3284_v8 = vadd.f32 %v1065_v16, %v910_v35 }
 0x166   : > { %v843_v38 = vpop.f32.mrb[60].mxu1  ;;  %v1030_v39 = vpop.f32.mrb[60].mxu0  ;;  %v3286_v1 = vadd.f32 %v1067_v20, %v911_v37 }
 0x167   : > { %v888_v40 = vrot.slane %v843_v38, 2  ;;  %v2371_v42 = vpop.f32.mrb[61].mxu1  ;;  %v1072_v44 = vrot.slane %v1030_v39, 3  ;;  %v2413_v46 = vpop.f32.mrb[61].mxu0 }
 0x168   : > { %v846_v47 = vpop.f32.mrb[62].mxu1  ;;  %v1033_v48 = vpop.f32.mrb[62].mxu0 }
 0x169   : > { %v889_v28 = vsel %vm695_vm2, %v886_v33, %v888_v40  ;;  %v890_v49 = vrot.slane %v846_v47, 2  ;;  %v2372_v50 = vpop.f32.mrb[63].mxu1  ;;  %v1073_v51 = vsel %vm1054_vm4, %v1070_v3, %v1072_v44  ;;  %v1074_v13 = vrot.slane %v1033_v48, 3  ;;  %v2414_v41 = vpop.f32.mrb[63].mxu0 }
 0x16a   : > { %v912_v52 = vadd.f32 %v889_v28, %v3241_v45 }
 0x16b   : > { %v891_v22 = vsel %vm695_vm2, %v888_v40, %v890_v49  ;;  %v1075_v55 = vsel %vm1054_vm4, %v1072_v44, %v1074_v13 }
 0x16c   : > { %v913_v56 = vadd.f32 %v891_v22, %v3248_v60  ;;  %v3294_v54 = vadd.f32 %v1069_v2, %v912_v52 }
 0x16e   : > { %v851_v59 = vpop.f32.mrb[64].mxu1  ;;  %v1038_v4 = vpop.f32.mrb[64].mxu0  ;;  %v3296_v9 = vadd.f32 %v1071_v18, %v913_v56 }
 0x16f   : > { %v892_v10 = vrot.slane %v851_v59, 2  ;;  %v2375_v11 = vpop.f32.mrb[65].mxu1  ;;  %v2417_v14 = vpop.f32.mrb[65].mxu0 }
 0x170   : > { %v854_v15 = vpop.f32.mrb[66].mxu1  ;;  %v1040_v43 = vpop.f32.mrb[66].mxu0 }
 0x171   : > { %v893_v6 = vsel %vm695_vm2, %v890_v49, %v892_v10  ;;  %v894_v45 = vrot.slane %v854_v15, 2  ;;  %v2376_v58 = vpop.f32.mrb[67].mxu1  ;;  %v2418_v16 = vpop.f32.mrb[67].mxu0 }
 0x172   : > { %v914_v57 = vadd.f32 %v893_v6, %v3250_v5 }
 0x173   : > { %v895_v60 = vsel %vm695_vm2, %v892_v10, %v894_v45 }
 0x174   : > { %v915_v0 = vadd.f32 %v895_v60, %v3254_v17  ;;  %v3302_v61 = vadd.f32 %v1073_v51, %v914_v57 }
 0x176   : > { %v3304_v19 = vadd.f32 %v1075_v55, %v915_v0  ;;  %v859_v20 = vpop.f32.mrb[68].mxu1  ;;  %v1351_v62 = vpop.f32.mrb[68].mxu0 }
 0x177   : > { %v2379_v23 = vpop.f32.mrb[69].mxu1  ;;  %v2469_v24 = vpop.f32.mrb[69].mxu0 }
 0x178   : > { %v861_v26 = vpop.f32.mrb[70].mxu1  ;;  %v1353_v27 = vpop.f32.mrb[70].mxu0 }
 0x179   : > { %v2380_v29 = vpop.f32.mrb[71].mxu1  ;;  %v2470_v30 = vpop.f32.mrb[71].mxu0 }
 0x17e   : > { %v1171_v31 = vpop.f32.mrb[72].mxu1  ;;  %v1357_v32 = vpop.f32.mrb[72].mxu0 }
 0x17f   : > { %v2431_v7 = vpop.f32.mrb[73].mxu1  ;;  %v1414_v5 = vrot.slane %v1357_v32, 4  ;;  %v2473_v33 = vpop.f32.mrb[73].mxu0 }
 0x180   : > { %v1173_v34 = vpop.f32.mrb[74].mxu1  ;;  %v1360_v2 = vpop.f32.mrb[74].mxu0 }
 0x181   : > { %v2432_v17 = vpop.f32.mrb[75].mxu1  ;;  %v1415_v3 = vrot.slane %v1360_v2, 4  ;;  %v2474_v12 = vpop.f32.mrb[75].mxu0  ;;  %v1235_v37 = vrot.slane %v1173_v34, 4 }
 0x183   : > { %v1416_v35 = vsel %vm1234_vm5, %v1414_v5, %v1415_v3 }
 0x186   : > { %v1178_v36 = vpop.f32.mrb[76].mxu1  ;;  %v1365_v18 = vpop.f32.mrb[76].mxu0 }
 0x187   : > { %v1236_v38 = vrot.slane %v1178_v36, 4  ;;  %v2435_v39 = vpop.f32.mrb[77].mxu1  ;;  %v1417_v40 = vrot.slane %v1365_v18, 4  ;;  %v2477_v42 = vpop.f32.mrb[77].mxu0 }
 0x188   : > { %v1181_v44 = vpop.f32.mrb[78].mxu1  ;;  %v1368_v46 = vpop.f32.mrb[78].mxu0 }
 0x189   : > { %v1237_v47 = vsel %vm1234_vm5, %v1235_v37, %v1236_v38  ;;  %v1238_v48 = vrot.slane %v1181_v44, 4  ;;  %v2436_v28 = vpop.f32.mrb[79].mxu1  ;;  %v1418_v49 = vsel %vm1234_vm5, %v1415_v3, %v1417_v40  ;;  %v1419_v50 = vrot.slane %v1368_v46, 4  ;;  %v2478_v51 = vpop.f32.mrb[79].mxu0 }
 0x18a   : > { %v1266_v13 = vadd.f32 %v1237_v47, %v3264_v53 }
 0x18b   : > { %v1239_v41 = vsel %vm1234_vm5, %v1236_v38, %v1238_v48  ;;  %v1420_v52 = vsel %vm1234_vm5, %v1417_v40, %v1419_v50 }
 0x18c   : > { %v3312_v22 = vadd.f32 %v1416_v35, %v1266_v13  ;;  %v1267_v55 = vadd.f32 %v1239_v41, %v3266_v63 }
 0x18e   : > { %v3315_v56 = vadd.f32 %v1418_v49, %v1267_v55  ;;  %v1186_v59 = vpop.f32.mrb[80].mxu1  ;;  %v1373_v4 = vpop.f32.mrb[80].mxu0 }
 0x18f   : > { %v1240_v10 = vrot.slane %v1186_v59, 4  ;;  %v2439_v11 = vpop.f32.mrb[81].mxu1  ;;  %v1421_v14 = vrot.slane %v1373_v4, 4  ;;  %v2481_v15 = vpop.f32.mrb[81].mxu0 }
 0x190   : > { %v1189_v43 = vpop.f32.mrb[82].mxu1  ;;  %v1376_v6 = vpop.f32.mrb[82].mxu0 }
 0x191   : > { %v1241_v53 = vsel %vm1234_vm5, %v1238_v48, %v1240_v10  ;;  %v1242_v45 = vrot.slane %v1189_v43, 4  ;;  %v2440_v58 = vpop.f32.mrb[83].mxu1  ;;  %v1422_v16 = vsel %vm1234_vm5, %v1419_v50, %v1421_v14  ;;  %v1423_v57 = vrot.slane %v1376_v6, 4  ;;  %v2482_v60 = vpop.f32.mrb[83].mxu0 }
 0x192   : > { %v1268_v63 = vadd.f32 %v1241_v53, %v3274_v21 }
 0x193   : > { %v1243_v0 = vsel %vm1234_vm5, %v1240_v10, %v1242_v45  ;;  %v1424_v20 = vsel %vm1234_vm5, %v1421_v14, %v1423_v57 }
 0x194   : > { %v3322_v62 = vadd.f32 %v1420_v52, %v1268_v63  ;;  %v1269_v23 = vadd.f32 %v1243_v0, %v3276_v25 }
 0x196   : > { %v3325_v24 = vadd.f32 %v1422_v16, %v1269_v23  ;;  %v1194_v26 = vpop.f32.mrb[84].mxu1  ;;  %v1381_v27 = vpop.f32.mrb[84].mxu0 }
 0x197   : > { %v1244_v29 = vrot.slane %v1194_v26, 4  ;;  %v2443_v30 = vpop.f32.mrb[85].mxu1  ;;  %v1425_v31 = vrot.slane %v1381_v27, 4  ;;  %v2485_v32 = vpop.f32.mrb[85].mxu0 }
 0x198   : > { %v1197_v7 = vpop.f32.mrb[86].mxu1  ;;  %v1384_v5 = vpop.f32.mrb[86].mxu0 }
 0x199   : > { %v1245_v21 = vsel %vm1234_vm5, %v1242_v45, %v1244_v29  ;;  %v1246_v33 = vrot.slane %v1197_v7, 4  ;;  %v2444_v34 = vpop.f32.mrb[87].mxu1  ;;  %v1426_v2 = vsel %vm1234_vm5, %v1423_v57, %v1425_v31  ;;  %v1427_v17 = vrot.slane %v1384_v5, 4  ;;  %v2486_v3 = vpop.f32.mrb[87].mxu0 }
 0x19a   : > { %v1270_v25 = vadd.f32 %v1245_v21, %v3284_v8 }
 0x19b   : > { %v1247_v12 = vsel %vm1234_vm5, %v1244_v29, %v1246_v33  ;;  %v1428_v35 = vsel %vm1234_vm5, %v1425_v31, %v1427_v17 }
 0x19c   : > { %v3332_v36 = vadd.f32 %v1424_v20, %v1270_v25  ;;  %v1271_v18 = vadd.f32 %v1247_v12, %v3286_v1 }
 0x19e   : > { %v3335_v37 = vadd.f32 %v1426_v2, %v1271_v18  ;;  %v1202_v38 = vpop.f32.mrb[88].mxu1  ;;  %v1389_v39 = vpop.f32.mrb[88].mxu0 }
 0x19f   : > { %v1248_v40 = vrot.slane %v1202_v38, 4  ;;  %v2447_v42 = vpop.f32.mrb[89].mxu1  ;;  %v1429_v44 = vrot.slane %v1389_v39, 4  ;;  %v2489_v46 = vpop.f32.mrb[89].mxu0 }
 0x1a0   : > { %v1205_v47 = vpop.f32.mrb[90].mxu1  ;;  %v1392_v48 = vpop.f32.mrb[90].mxu0 }
 0x1a1   : > { %v1249_v8 = vsel %vm1234_vm5, %v1246_v33, %v1248_v40  ;;  %v1250_v28 = vrot.slane %v1205_v47, 4  ;;  %v2448_v49 = vpop.f32.mrb[91].mxu1  ;;  %v1430_v50 = vsel %vm1234_vm5, %v1427_v17, %v1429_v44  ;;  %v1431_v51 = vrot.slane %v1392_v48, 4  ;;  %v2490_v13 = vpop.f32.mrb[91].mxu0 }
 0x1a2   : > { %v1272_v1 = vadd.f32 %v1249_v8, %v3294_v54 }
 0x1a3   : > { %v1251_v41 = vsel %vm1234_vm5, %v1248_v40, %v1250_v28  ;;  %v1432_v52 = vsel %vm1234_vm5, %v1429_v44, %v1431_v51 }
 0x1a4   : > { %v3342_v55 = vadd.f32 %v1428_v35, %v1272_v1  ;;  %v1273_v59 = vadd.f32 %v1251_v41, %v3296_v9 }
 0x1a6   : > { %v3345_v4 = vadd.f32 %v1430_v50, %v1273_v59  ;;  %v1210_v10 = vpop.f32.mrb[92].mxu1  ;;  %v1397_v11 = vpop.f32.mrb[92].mxu0 }
 0x1a7   : > { %v1252_v14 = vrot.slane %v1210_v10, 4  ;;  %v2451_v15 = vpop.f32.mrb[93].mxu1  ;;  %v1433_v43 = vrot.slane %v1397_v11, 4  ;;  %v2493_v6 = vpop.f32.mrb[93].mxu0 }
 0x1a8   : > { %v1213_v53 = vpop.f32.mrb[94].mxu1  ;;  %v1400_v45 = vpop.f32.mrb[94].mxu0 }
 0x1a9   : > { %v1253_v54 = vsel %vm1234_vm5, %v1250_v28, %v1252_v14  ;;  %v1254_v58 = vrot.slane %v1213_v53, 4  ;;  %v2452_v16 = vpop.f32.mrb[95].mxu1  ;;  %v1434_v57 = vsel %vm1234_vm5, %v1431_v51, %v1433_v43  ;;  %v2494_v60 = vpop.f32.mrb[95].mxu0 }
 0x1aa   : > { %v1274_v63 = vadd.f32 %v1253_v54, %v3302_v61 }
 0x1ab   : > { %v1255_v9 = vsel %vm1234_vm5, %v1252_v14, %v1254_v58 }
 0x1ac   : > { %v3351_v0 = vadd.f32 %v1432_v52, %v1274_v63  ;;  %v1275_v20 = vadd.f32 %v1255_v9, %v3304_v19 }
 0x1ae   : > { %v3354_v23 = vadd.f32 %v1434_v57, %v1275_v20  ;;  %v1218_v26 = vpop.f32.mrb[96].mxu1  ;;  %v1710_v27 = vpop.f32.mrb[96].mxu0 }
 0x1af   : > { %v2455_v29 = vpop.f32.mrb[97].mxu1  ;;  %v2545_v30 = vpop.f32.mrb[97].mxu0 }
 0x1b0   : > { %v1220_v31 = vpop.f32.mrb[98].mxu1  ;;  %v1712_v32 = vpop.f32.mrb[98].mxu0 }
 0x1b1   : > { %v2456_v7 = vpop.f32.mrb[99].mxu1  ;;  %v2546_v5 = vpop.f32.mrb[99].mxu0 }
 0x1b6   : > { %v1530_v21 = vpop.f32.mrb[100].mxu1  ;;  %v1716_v33 = vpop.f32.mrb[100].mxu0 }
 0x1b7   : > { %v2507_v34 = vpop.f32.mrb[101].mxu1  ;;  %v1774_v61 = vrot.slane %v1716_v33, 6  ;;  %v2549_v2 = vpop.f32.mrb[101].mxu0 }
 0x1b8   : > { %v1532_v17 = vpop.f32.mrb[102].mxu1  ;;  %v1719_v3 = vpop.f32.mrb[102].mxu0 }
 0x1b9   : > { %v2508_v19 = vpop.f32.mrb[103].mxu1  ;;  %v1775_v25 = vrot.slane %v1719_v3, 6  ;;  %v2550_v12 = vpop.f32.mrb[103].mxu0 }
 0x1bb   : > { %v1776_v35 = vsel %vm1773_vm6, %v1774_v61, %v1775_v25 }
 0x1be   : > { %v1536_v18 = vpop.f32.mrb[104].mxu1  ;;  %v1724_v38 = vpop.f32.mrb[104].mxu0 }
 0x1bf   : > { %v2511_v39 = vpop.f32.mrb[105].mxu1  ;;  %v1777_v40 = vrot.slane %v1724_v38, 6  ;;  %v2553_v42 = vpop.f32.mrb[105].mxu0  ;;  %v1594_v47 = vrot.slane %v1536_v18, 5 }
 0x1c0   : > { %v1539_v44 = vpop.f32.mrb[106].mxu1  ;;  %v1727_v46 = vpop.f32.mrb[106].mxu0 }
 0x1c1   : > { %v1595_v48 = vrot.slane %v1539_v44, 5  ;;  %v2512_v8 = vpop.f32.mrb[107].mxu1  ;;  %v1778_v28 = vsel %vm1773_vm6, %v1775_v25, %v1777_v40  ;;  %v1779_v49 = vrot.slane %v1727_v46, 6  ;;  %v2554_v50 = vpop.f32.mrb[107].mxu0 }
 0x1c3   : > { %v1596_v51 = vsel %vm1593_vm7, %v1594_v47, %v1595_v48  ;;  %v1780_v13 = vsel %vm1773_vm6, %v1777_v40, %v1779_v49 }
 0x1c4   : > { %v1625_v1 = vadd.f32 %v1596_v51, %v3312_v22 }
 0x1c6   : > { %v1805_v41 = vadd.f32 %v1776_v35, %v1625_v1  ;;  %v1544_v52 = vpop.f32.mrb[108].mxu1  ;;  %v1732_v59 = vpop.f32.mrb[108].mxu0 }
 0x1c7   : > { %v1597_v10 = vrot.slane %v1544_v52, 5  ;;  %v2515_v11 = vpop.f32.mrb[109].mxu1  ;;  %v1781_v14 = vrot.slane %v1732_v59, 6  ;;  %v2557_v15 = vpop.f32.mrb[109].mxu0 }
 0x1c8   : > { %1815 = vst [vmem:[%s3365_s14] sm:$0xff] %v1805_v41  ;;  %v1547_v43 = vpop.f32.mrb[110].mxu1  ;;  %v1735_v6 = vpop.f32.mrb[110].mxu0 }
 0x1c9   : > { %v1598_v53 = vsel %vm1593_vm7, %v1595_v48, %v1597_v10  ;;  %v1599_v22 = vrot.slane %v1547_v43, 5  ;;  %v2516_v45 = vpop.f32.mrb[111].mxu1  ;;  %v1782_v54 = vsel %vm1773_vm6, %v1779_v49, %v1781_v14  ;;  %v1783_v58 = vrot.slane %v1735_v6, 6  ;;  %v2558_v16 = vpop.f32.mrb[111].mxu0 }
 0x1ca   : > { %v1626_v57 = vadd.f32 %v1598_v53, %v3315_v56 }
 0x1cb   : > { %v1600_v60 = vsel %vm1593_vm7, %v1597_v10, %v1599_v22  ;;  %v1784_v63 = vsel %vm1773_vm6, %v1781_v14, %v1783_v58 }
 0x1cc   : > { %v1806_v9 = vadd.f32 %v1778_v28, %v1626_v57  ;;  %v1627_v20 = vadd.f32 %v1600_v60, %v3322_v62 }
 0x1ce   : > { %1816 = vst [vmem:[%s3365_s14 + $0x8] sm:$0xff] %v1806_v9  ;;  %v1807_v26 = vadd.f32 %v1780_v13, %v1627_v20  ;;  %v1552_v27 = vpop.f32.mrb[112].mxu1  ;;  %v1740_v29 = vpop.f32.mrb[112].mxu0 }
 0x1cf   : > { %v1601_v30 = vrot.slane %v1552_v27, 5  ;;  %v2519_v31 = vpop.f32.mrb[113].mxu1  ;;  %v1785_v32 = vrot.slane %v1740_v29, 6  ;;  %v2561_v7 = vpop.f32.mrb[113].mxu0 }
 0x1d0   : > { %1817 = vst [vmem:[%s3365_s14 + $0x10] sm:$0xff] %v1807_v26  ;;  %v1555_v5 = vpop.f32.mrb[114].mxu1  ;;  %v1743_v21 = vpop.f32.mrb[114].mxu0 }
 0x1d1   : > { %v1602_v56 = vsel %vm1593_vm7, %v1599_v22, %v1601_v30  ;;  %v1603_v33 = vrot.slane %v1555_v5, 5  ;;  %v2520_v34 = vpop.f32.mrb[115].mxu1  ;;  %v1786_v61 = vsel %vm1773_vm6, %v1783_v58, %v1785_v32  ;;  %v1787_v62 = vrot.slane %v1743_v21, 6  ;;  %v2562_v2 = vpop.f32.mrb[115].mxu0 }
 0x1d2   : > { %v1628_v17 = vadd.f32 %v1602_v56, %v3325_v24 }
 0x1d3   : > { %v1604_v3 = vsel %vm1593_vm7, %v1601_v30, %v1603_v33  ;;  %v1788_v19 = vsel %vm1773_vm6, %v1785_v32, %v1787_v62 }
 0x1d4   : > { %v1808_v25 = vadd.f32 %v1782_v54, %v1628_v17  ;;  %v1629_v12 = vadd.f32 %v1604_v3, %v3332_v36 }
 0x1d6   : > { %1818 = vst [vmem:[%s3365_s14 + $0x18] sm:$0xff] %v1808_v25  ;;  %v1809_v35 = vadd.f32 %v1784_v63, %v1629_v12  ;;  %v1560_v18 = vpop.f32.mrb[116].mxu1  ;;  %v1748_v38 = vpop.f32.mrb[116].mxu0 }
 0x1d7   : > { %v1605_v39 = vrot.slane %v1560_v18, 5  ;;  %v2523_v40 = vpop.f32.mrb[117].mxu1  ;;  %v1789_v42 = vrot.slane %v1748_v38, 6  ;;  %v2565_v44 = vpop.f32.mrb[117].mxu0 }
 0x1d8   : > { %1819 = vst [vmem:[%s3365_s14 + $0x20] sm:$0xff] %v1809_v35  ;;  %v1563_v46 = vpop.f32.mrb[118].mxu1  ;;  %v1751_v47 = vpop.f32.mrb[118].mxu0 }
 0x1d9   : > { %v1606_v24 = vsel %vm1593_vm7, %v1603_v33, %v1605_v39  ;;  %v1607_v48 = vrot.slane %v1563_v46, 5  ;;  %v2524_v8 = vpop.f32.mrb[119].mxu1  ;;  %v1790_v28 = vsel %vm1773_vm6, %v1787_v62, %v1789_v42  ;;  %v1791_v36 = vrot.slane %v1751_v47, 6  ;;  %v2566_v49 = vpop.f32.mrb[119].mxu0 }
 0x1da   : > { %v1630_v50 = vadd.f32 %v1606_v24, %v3335_v37 }
 0x1db   : > { %v1608_v51 = vsel %vm1593_vm7, %v1605_v39, %v1607_v48  ;;  %v1792_v13 = vsel %vm1773_vm6, %v1789_v42, %v1791_v36 }
 0x1dc   : > { %v1810_v1 = vadd.f32 %v1786_v61, %v1630_v50  ;;  %v1631_v41 = vadd.f32 %v1608_v51, %v3342_v55 }
 0x1de   : > { %1820 = vst [vmem:[%s3365_s14 + $0x28] sm:$0xff] %v1810_v1  ;;  %v1811_v52 = vadd.f32 %v1788_v19, %v1631_v41  ;;  %v1568_v59 = vpop.f32.mrb[120].mxu1  ;;  %v1756_v10 = vpop.f32.mrb[120].mxu0 }
 0x1df   : > { %v1609_v11 = vrot.slane %v1568_v59, 5  ;;  %v2527_v14 = vpop.f32.mrb[121].mxu1  ;;  %v1793_v15 = vrot.slane %v1756_v10, 6  ;;  %v2569_v43 = vpop.f32.mrb[121].mxu0 }
 0x1e0   : > { %1821 = vst [vmem:[%s3365_s14 + $0x30] sm:$0xff] %v1811_v52  ;;  %v1571_v6 = vpop.f32.mrb[122].mxu1  ;;  %v1759_v37 = vpop.f32.mrb[122].mxu0 }
 0x1e1   : > { %v1610_v53 = vsel %vm1593_vm7, %v1607_v48, %v1609_v11  ;;  %v1611_v22 = vrot.slane %v1571_v6, 5  ;;  %v2528_v45 = vpop.f32.mrb[123].mxu1  ;;  %v1794_v54 = vsel %vm1773_vm6, %v1791_v36, %v1793_v15  ;;  %v2570_v55 = vpop.f32.mrb[123].mxu0 }
 0x1e2   : > { %v1632_v58 = vadd.f32 %v1610_v53, %v3345_v4 }
 0x1e3   : > { %v1612_v16 = vsel %vm1593_vm7, %v1609_v11, %v1611_v22 }
 0x1e4   : > { %v1812_v57 = vadd.f32 %v1790_v28, %v1632_v58  ;;  %v1633_v60 = vadd.f32 %v1612_v16, %v3351_v0 }
 0x1e6   : > { %1822 = vst [vmem:[%s3365_s14 + $0x38] sm:$0xff] %v1812_v57  ;;  %v1813_v63 = vadd.f32 %v1792_v13, %v1633_v60  ;;  %v1576_v9 = vpop.f32.mrb[124].mxu1 }
 0x1e7   : > { %v1613_v20 = vrot.slane %v1576_v9, 5  ;;  %v2531_v26 = vpop.f32.mrb[125].mxu1 }
 0x1e8   : > { %1823 = vst [vmem:[%s3365_s14 + $0x40] sm:$0xff] %v1813_v63  ;;  %v1579_v27 = vpop.f32.mrb[126].mxu1 }
 0x1e9   : > { %v1614_v29 = vsel %vm1593_vm7, %v1611_v22, %v1613_v20  ;;  %v2532_v30 = vpop.f32.mrb[127].mxu1 }
 0x1ea   : > { %v1634_v31 = vadd.f32 %v1614_v29, %v3354_v23 }
 0x1ec   : > { %v1814_v32 = vadd.f32 %v1794_v54, %v1634_v31 }
 0x1ee   : > { %1824 = vst [vmem:[%s3365_s14 + $0x48] sm:$0xff] %v1814_v32 }
 0x1ef PF: > { %s12_s11 = sadd.s32 1, %s2683_s11   ;;  %s3414_s9 = smov %s2679_s10 }
 0x1f0   : > { %p9_p5 = scmp.ge.s32.totalorder %s12_s11, 4   ;;  %s3415_s10 = smov %s3417_s12 }
 0x1f2   :  { %11 = sbr.rel (!%p9_p5) target bundleno = 2 (0x2), region = 66 }

</bundles_post_ra>
